<compile_context>
chip_gen: v7x
topology: tpu7x:2x2x1
jax: 0.10.0
libtpu: 0.0.40
codegen_flags: <defaults>
</compile_context>

<pallas_src>
import numpy as np
import jax
import jax.numpy as jnp
from jax.experimental import pallas as pl
from jax.experimental.pallas import tpu as pltpu

# ----------------------------- model config ---------------------------------
IMG = 16                    # input spatial size
IN_CH = 3                   # RGB spectrogram image
PATCH = 4                   # patch size -> 16 patches
DIM = 32                    # ViT hidden dim
HEADS = 4                   # attention heads
HEAD_DIM = DIM // HEADS     # 8
MLP = 64                    # ViT MLP hidden dim
NUM_INSTRUMENTS = 4
C0, L0 = 16, 8              # WaveGAN head: channels / length after dense
C1, L1 = C0 // 2, 2 * L0    # after first ConvTranspose1d
AUDIO_LEN = 2 * L1          # 32 samples after second ConvTranspose1d

NY = NX = IMG // PATCH
N_PATCH = NY * NX           # 16
N_TOK = N_PATCH + 1         # 17 = CLS + patches
T_PAD = 24                  # tokens padded to a sublane multiple (8 | 24)
PATCH_DIM = IN_CH * PATCH * PATCH   # 48

HEAD_LANES = NUM_INSTRUMENTS * C0 * L0      # 512 (stacked WaveGAN hidden)
OUT_LANES = NUM_INSTRUMENTS * AUDIO_LEN     # 128 (stacked waveform output)

# -------------------- packed weight-slab layout (row offsets) ----------------
# 32-lane f32 slab
W32_PE = 0
W32_VO = W32_PE + PATCH_DIM                 # 48
W32_M2 = W32_VO + HEADS * DIM               # 176
W32_BIAS = W32_M2 + MLP                     # 240 (8-aligned bias block)
(R_LN1G, R_LN1B, R_ATTNB, R_LN2G,
 R_LN2B, R_BM2, R_LNFG, R_LNFB) = range(W32_BIAS, W32_BIAS + 8)
W32_TOKB = W32_BIAS + 8                     # 248
W32_ROWS = W32_TOKB + T_PAD                 # 272

# 64-lane f32 slab
W64_QK = 0
W64_M1 = DIM                                # 32
W64_BQK = 2 * DIM                           # 64
W64_BM1 = W64_BQK + 1                       # 65
W64_ROWS = 72

# 512-lane bf16 slab (WaveGAN head stack)
W512_FC = 0
W512_M1 = DIM                               # 32
W512_BFC = W512_M1 + HEAD_LANES             # 544
W512_B1 = W512_BFC + 1                      # 545
W512_ROWS = 552

# 128-lane bf16 slab
W128_M2 = 0
W128_B2 = HEAD_LANES                        # 512
W128_ROWS = 520


# ----------------------------- parameters ------------------------------------
def _normal(key, shape, std):
    return (std * jax.random.normal(key, shape)).astype(jnp.float32)


def init_params(key):
    """Raw (PyTorch-like) parameters for the stand-in model."""
    ks = iter(jax.random.split(key, 64))
    p = {
        # ViT backbone (vit_b_16 stand-in)
        "W_pe": _normal(next(ks), (PATCH_DIM, DIM), 0.02),
        "b_pe": jnp.zeros((1, DIM), jnp.float32),
        "cls": _normal(next(ks), (1, 1, DIM), 0.02),
        "pos": _normal(next(ks), (1, N_TOK, DIM), 0.02),
        "ln1_g": jnp.ones((1, DIM), jnp.float32),
        "ln1_b": jnp.zeros((1, DIM), jnp.float32),
        "W_qkv": _normal(next(ks), (DIM, 3 * DIM), 0.02),
        "b_qkv": jnp.zeros((1, 3 * DIM), jnp.float32),
        "W_o": _normal(next(ks), (DIM, DIM), 0.02),
        "b_o": jnp.zeros((1, DIM), jnp.float32),
        "ln2_g": jnp.ones((1, DIM), jnp.float32),
        "ln2_b": jnp.zeros((1, DIM), jnp.float32),
        "W_m1": _normal(next(ks), (DIM, MLP), 0.02),
        "b_m1": jnp.zeros((1, MLP), jnp.float32),
        "W_m2": _normal(next(ks), (MLP, DIM), 0.02),
        "b_m2": jnp.zeros((1, DIM), jnp.float32),
        "lnf_g": jnp.ones((1, DIM), jnp.float32),
        "lnf_b": jnp.zeros((1, DIM), jnp.float32),
    }
    heads = []
    for _ in range(NUM_INSTRUMENTS):
        heads.append({
            "W_fc": _normal(next(ks), (DIM, C0 * L0), 0.05),
            "b_fc": jnp.zeros((1, C0 * L0), jnp.float32),
            "W_ct1": _normal(next(ks), (4, C0, C1), 0.05),   # [k, Cin, Cout]
            "b_ct1": jnp.zeros((1, C1), jnp.float32),
            "W_ct2": _normal(next(ks), (4, C1, 1), 0.05),
            "b_ct2": jnp.zeros((1, 1), jnp.float32),
        })
    p["wavegan_heads"] = heads
    return p


# ----------------------- one-time parameter fusion ----------------------------
def _convt_dense(w, lin):
    """ConvTranspose1d(k=4, s=2, p=1) as a dense matrix (channels-last flatten).

    w: [k, Cin, Cout].  Maps x flattened as (l*Cin + ci) to y flattened as
    (j*Cout + co), with y[j] = sum_l x[l] @ w[j - 2l + 1]  (valid taps only).
    """
    k, cin, cout = w.shape
    lout = 2 * lin
    m = np.zeros((lin * cin, lout * cout), np.float32)
    for i in range(lin):
        for t in range(k):
            j = 2 * i + t - 1
            if 0 <= j < lout:
                m[i * cin:(i + 1) * cin, j * cout:(j + 1) * cout] = w[t]
    return m


def _block_diag(blocks):
    rows = sum(b.shape[0] for b in blocks)
    cols = sum(b.shape[1] for b in blocks)
    out = np.zeros((rows, cols), np.float32)
    r = c = 0
    for b in blocks:
        out[r:r + b.shape[0], c:c + b.shape[1]] = b
        r += b.shape[0]
        c += b.shape[1]
    return out


def prepare_fused_params(params):
    """Transform raw params into the four packed slabs the kernel consumes."""
    d = DIM
    b_pe = np.asarray(params["b_pe"])[0]
    pos = np.asarray(params["pos"])[0]                 # [N_TOK, D]
    cls = np.asarray(params["cls"])[0, 0]              # [D]
    w_qkv = np.asarray(params["W_qkv"])
    b_qkv = np.asarray(params["b_qkv"])[0]
    w_o = np.asarray(params["W_o"])
    b_o = np.asarray(params["b_o"])[0]

    # Token bias added AFTER the patch-embed matmul (b_pe folded in here).
    # CLS row = cls + pos[0] (no b_pe: CLS is not conv-embedded); pad rows = 0
    # (they are masked as attention keys and never read elsewhere).
    tok_bias = np.zeros((T_PAD, d), np.float32)
    tok_bias[0] = cls + pos[0]
    tok_bias[1:N_TOK] = pos[1:] + b_pe

    # Fold W_v into W_o per head: W_vo_h = W_v_h @ W_o_h  -> row-stacked [4*32, 32].
    w_vo = np.concatenate(
        [w_qkv[:, 2 * d + h * HEAD_DIM: 2 * d + (h + 1) * HEAD_DIM]
         @ w_o[h * HEAD_DIM:(h + 1) * HEAD_DIM, :] for h in range(HEADS)],
        axis=0).astype(np.float32)
    # b_v contribution folded via sum_k softmax(k) == 1 (exact up to approx recip).
    attn_bias = (b_o + b_qkv[2 * d:] @ w_o).astype(np.float32)

    # ---- 32-lane f32 slab ----
    w32 = np.zeros((W32_ROWS, d), np.float32)
    w32[W32_PE:W32_PE + PATCH_DIM] = np.asarray(params["W_pe"])
    w32[W32_VO:W32_VO + HEADS * d] = w_vo
    w32[W32_M2:W32_M2 + MLP] = np.asarray(params["W_m2"])
    w32[R_LN1G] = np.asarray(params["ln1_g"])[0]
    w32[R_LN1B] = np.asarray(params["ln1_b"])[0]
    w32[R_ATTNB] = attn_bias
    w32[R_LN2G] = np.asarray(params["ln2_g"])[0]
    w32[R_LN2B] = np.asarray(params["ln2_b"])[0]
    w32[R_BM2] = np.asarray(params["b_m2"])[0]
    w32[R_LNFG] = np.asarray(params["lnf_g"])[0]
    w32[R_LNFB] = np.asarray(params["lnf_b"])[0]
    w32[W32_TOKB:W32_TOKB + T_PAD] = tok_bias

    # ---- 64-lane f32 slab ----
    w64 = np.zeros((W64_ROWS, 2 * d), np.float32)
    w64[W64_QK:W64_QK + d] = w_qkv[:, :2 * d]          # Q and K projections only
    w64[W64_M1:W64_M1 + d] = np.asarray(params["W_m1"])
    w64[W64_BQK] = b_qkv[:2 * d]
    w64[W64_BM1] = np.asarray(params["b_m1"])[0]

    # ---- WaveGAN head stack: 512-lane and 128-lane bf16 slabs ----
    w_fc_c, b_fc_c, m1_b, b1_c, m2_b, b2_c = [], [], [], [], [], []
    for hp in params["wavegan_heads"]:
        # permute dense columns NCW (c*L0 + l) -> channels-last (l*C0 + c)
        w = np.asarray(hp["W_fc"]).reshape(d, C0, L0).transpose(0, 2, 1).reshape(d, L0 * C0)
        w_fc_c.append(w)
        b_fc_c.append(np.asarray(hp["b_fc"]).reshape(C0, L0).T.reshape(L0 * C0))
        m1_b.append(_convt_dense(np.asarray(hp["W_ct1"]), L0))          # [128,128]
        b1_c.append(np.tile(np.asarray(hp["b_ct1"]).reshape(-1), L1))
        m2_b.append(_convt_dense(np.asarray(hp["W_ct2"]), L1))          # [128, 32]
        b2_c.append(np.tile(np.asarray(hp["b_ct2"]).reshape(-1), AUDIO_LEN))

    w512 = np.zeros((W512_ROWS, HEAD_LANES), np.float32)
    w512[W512_FC:W512_FC + d] = np.concatenate(w_fc_c, axis=1)          # [32, 512]
    w512[W512_M1:W512_M1 + HEAD_LANES] = _block_diag(m1_b)              # [512, 512]
    w512[W512_BFC] = np.concatenate(b_fc_c)
    w512[W512_B1] = np.concatenate(b1_c)

    w128 = np.zeros((W128_ROWS, OUT_LANES), np.float32)
    w128[W128_M2:W128_M2 + HEAD_LANES] = _block_diag(m2_b)              # [512, 128]
    w128[W128_B2] = np.concatenate(b2_c)

    return {
        "w32": jnp.asarray(w32, jnp.float32),
        "w64": jnp.asarray(w64, jnp.float32),
        "w512": jnp.asarray(w512, jnp.bfloat16),   # bf16 MXU operands
        "w128": jnp.asarray(w128, jnp.bfloat16),
    }


# ----------------------------- fused Pallas kernel ----------------------------
def _fused_forward_kernel(x_ref, w32_ref, w64_ref, w512_ref, w128_ref, out_ref):
    f32 = jnp.float32
    bf16 = jnp.bfloat16
    d, dh, tp = DIM, HEAD_DIM, T_PAD
    scale = 1.0 / float(np.sqrt(dh))

    def ln(v, g, b):
        mu = jnp.mean(v, axis=-1, keepdims=True)
        vc = v - mu
        var = jnp.mean(vc * vc, axis=-1, keepdims=True)
        return vc * jax.lax.rsqrt(var + 1e-6) * g + b

    def mm(a, w):
        return jnp.dot(a, w, preferred_element_type=f32)

    x = x_ref[0]                                         # [24, 48] one batch element

    # ---- static slab views (weights fetched once; grid index (0,0)) ---------
    w_pe = w32_ref[W32_PE:W32_PE + PATCH_DIM, :]         # [48, 32]
    w_vo = w32_ref[W32_VO:W32_VO + HEADS * d, :]         # [128, 32] per-head row blocks
    w_m2 = w32_ref[W32_M2:W32_M2 + MLP, :]               # [64, 32]
    ln1_g = w32_ref[R_LN1G:R_LN1G + 1, :]
    ln1_b = w32_ref[R_LN1B:R_LN1B + 1, :]
    attn_b = w32_ref[R_ATTNB:R_ATTNB + 1, :]
    ln2_g = w32_ref[R_LN2G:R_LN2G + 1, :]
    ln2_b = w32_ref[R_LN2B:R_LN2B + 1, :]
    b_m2 = w32_ref[R_BM2:R_BM2 + 1, :]
    lnf_g = w32_ref[R_LNFG:R_LNFG + 1, :]
    lnf_b = w32_ref[R_LNFB:R_LNFB + 1, :]
    tok_bias = w32_ref[W32_TOKB:W32_TOKB + T_PAD, :]     # [24, 32]

    w_qk = w64_ref[W64_QK:W64_QK + d, :]                 # [32, 64]
    w_m1 = w64_ref[W64_M1:W64_M1 + d, :]                 # [32, 64]
    b_qk = w64_ref[W64_BQK:W64_BQK + 1, :]
    b_m1 = w64_ref[W64_BM1:W64_BM1 + 1, :]

    # ---- patch embedding + CLS/positional bias (b_pe folded into tok_bias) --
    tok = mm(x, w_pe) + tok_bias                         # [24, 32]

    # ---- pre-norm MHA, CLS query row only (single block => only CLS matters)
    x_ln = ln(tok, ln1_g, ln1_b)                         # [24, 32]
    qk = mm(x_ln, w_qk) + b_qk                           # [24, 64]
    q_cls = qk[0:1, 0:d]                                 # [1, 32] CLS query
    k = qk[:, d:2 * d]                                   # [24, 32] all keys

    key_ok = jax.lax.broadcasted_iota(jnp.int32, (1, tp), 1) < N_TOK   # mask pad keys

    acc = attn_b                                          # b_o + b_v @ W_o folded
    for h in range(HEADS):                                # static unroll, 4 heads
        c = h * dh
        s = jax.lax.dot_general(q_cls[:, c:c + dh], k[:, c:c + dh],
                                (((1,), (1,)), ((), ())),
                                preferred_element_type=f32) * scale     # [1, 24]
        s = jnp.where(key_ok, s, -1e30)
        s = s - jnp.max(s, axis=-1, keepdims=True)
        p = jnp.exp(s)
        p = p * pl.reciprocal(jnp.sum(p, axis=-1, keepdims=True), approx=True)
        ctx = mm(p, x_ln)                                               # [1, 32]
        acc = acc + mm(ctx, w_vo[h * d:(h + 1) * d, :])                 # W_v@W_o fold
    cls = tok[0:1, :] + acc                               # residual, CLS row only

    # ---- MLP + final LN on the [1, 32] CLS row only --------------------------
    # TODO(synk): torchvision ViT uses exact erf-GELU; tanh approximation used here.
    hmid = jax.nn.gelu(mm(ln(cls, ln2_g, ln2_b), w_m1) + b_m1, approximate=True)
    cls = cls + mm(hmid, w_m2) + b_m2
    feat = ln(cls, lnf_g, lnf_b)                          # [1, 32] CLS feature

    # ---- all 4 WaveGAN heads: 3 stacked lane-dense matmuls (bf16 MXU) --------
    g = mm(feat.astype(bf16), w512_ref[W512_FC:W512_FC + d, :])
    g = jnp.maximum(g + w512_ref[W512_BFC:W512_BFC + 1, :].astype(f32), 0.0)   # Linear+ReLU
    g = mm(g.astype(bf16), w512_ref[W512_M1:W512_M1 + HEAD_LANES, :])
    g = jnp.maximum(g + w512_ref[W512_B1:W512_B1 + 1, :].astype(f32), 0.0)     # ConvT1+ReLU
    g = mm(g.astype(bf16), w128_ref[W128_M2:W128_M2 + HEAD_LANES, :])
    out_ref[0] = jnp.tanh(g + w128_ref[W128_B2:W128_B2 + 1, :].astype(f32))    # ConvT2+tanh


# ----------------------------- forward wrapper --------------------------------
@jax.jit
def _fused_forward(fused, x):
    B = x.shape[0]
    # patchify NCHW [B,3,16,16] -> [B, N_PATCH, PATCH_DIM]  (input prep, runs once)
    p = x.astype(jnp.float32).reshape(B, IN_CH, NY, PATCH, NX, PATCH)
    p = p.transpose(0, 2, 4, 1, 3, 5).reshape(B, N_PATCH, PATCH_DIM)
    # prepend a zero CLS row and pad tokens to T_PAD (sublane aligned)
    xt = jnp.concatenate(
        [jnp.zeros((B, 1, PATCH_DIM), jnp.float32), p,
         jnp.zeros((B, T_PAD - N_TOK, PATCH_DIM), jnp.float32)], axis=1)   # [B,24,48]

    flops_per = 2 * (T_PAD * PATCH_DIM * DIM + T_PAD * DIM * 2 * DIM
                     + HEADS * (HEAD_DIM * T_PAD + T_PAD * DIM + DIM * DIM)
                     + DIM * MLP + MLP * DIM
                     + DIM * HEAD_LANES + HEAD_LANES * HEAD_LANES
                     + HEAD_LANES * OUT_LANES)
    bytes_fixed = ((W32_ROWS * DIM + W64_ROWS * 2 * DIM) * 4
                   + (W512_ROWS * HEAD_LANES + W128_ROWS * OUT_LANES) * 2)

    out = pl.pallas_call(
        _fused_forward_kernel,
        grid_spec=pltpu.PrefetchScalarGridSpec(
            num_scalar_prefetch=0,
            grid=(B,),
            in_specs=[
                pl.BlockSpec((1, T_PAD, PATCH_DIM), lambda b: (b, 0, 0)),
                pl.BlockSpec((W32_ROWS, DIM), lambda b: (0, 0)),
                pl.BlockSpec((W64_ROWS, 2 * DIM), lambda b: (0, 0)),
                pl.BlockSpec((W512_ROWS, HEAD_LANES), lambda b: (0, 0)),
                pl.BlockSpec((W128_ROWS, OUT_LANES), lambda b: (0, 0)),
            ],
            out_specs=pl.BlockSpec((1, 1, OUT_LANES), lambda b: (b, 0, 0)),
        ),
        out_shape=jax.ShapeDtypeStruct((B, 1, OUT_LANES), jnp.float32),
        compiler_params=pltpu.CompilerParams(
            dimension_semantics=("parallel",)),
        cost_estimate=pl.CostEstimate(
            flops=B * flops_per,
            transcendentals=B * (HEADS * T_PAD + MLP + OUT_LANES + 64),
            bytes_accessed=bytes_fixed + B * (T_PAD * PATCH_DIM * 4 + OUT_LANES * 4)),
    )(xt, fused["w32"], fused["w64"], fused["w512"], fused["w128"])
    return out.reshape(B, NUM_INSTRUMENTS, AUDIO_LEN)


def multitasked_wavegan_forward(fused, x):
    """x: NCHW [B, 3, 16, 16] -> list of NUM_INSTRUMENTS waveforms [B, 1, 32]."""
    wav = _fused_forward(fused, x)
    return [wav[:, i:i + 1, :] for i in range(NUM_INSTRUMENTS)]


# ----------------------------- driver ----------------------------------------
if __name__ == "__main__":
    key = jax.random.PRNGKey(0)
    pkey, xkey = jax.random.split(key)
    params = init_params(pkey)
    fused = prepare_fused_params(params)

    x = jax.random.normal(xkey, (2, IN_CH, IMG, IMG), dtype=jnp.float32)

    outputs = multitasked_wavegan_forward(fused, x)
    outputs = jax.block_until_ready(outputs)

    assert len(outputs) == NUM_INSTRUMENTS
    for o in outputs:
        assert o.shape == (2, 1, AUDIO_LEN), o.shape
        assert o.dtype == jnp.float32
        assert bool(jnp.all(jnp.isfinite(o)))

    print("KERNEL_OK")
</pallas_src>

<mosaic_0001>
module attributes {stable_mosaic.version = 11 : i64} {
  func.func @_fused_forward_kernel(%arg0: i32, %arg1: memref<1x24x48xf32, #tpu.memory_space<vmem>>, %arg2: memref<272x32xf32, #tpu.memory_space<vmem>>, %arg3: memref<72x64xf32, #tpu.memory_space<vmem>>, %arg4: memref<552x512xbf16, #tpu.memory_space<vmem>>, %arg5: memref<520x128xbf16, #tpu.memory_space<vmem>>, %arg6: memref<1x1x128xf32, #tpu.memory_space<vmem>>) attributes {dimension_semantics = [#tpu.dimension_semantics<parallel>], iteration_bounds = array<i64: 2>, scalar_prefetch = 0 : i64, scratch_operands = 0 : i64, tpu.core_type = #tpu.core_type<tc>, window_params = [{transform_indices = @transform_0, window_bounds = array<i64: 1, 24, 48>}, {pipeline_mode = #tpu.pipeline_mode<synchronous>, transform_indices = @transform_1, window_bounds = array<i64: 272, 32>}, {pipeline_mode = #tpu.pipeline_mode<synchronous>, transform_indices = @transform_2, window_bounds = array<i64: 72, 64>}, {pipeline_mode = #tpu.pipeline_mode<synchronous>, transform_indices = @transform_3, window_bounds = array<i64: 552, 512>}, {pipeline_mode = #tpu.pipeline_mode<synchronous>, transform_indices = @transform_4, window_bounds = array<i64: 520, 128>}, {transform_indices = @transform_5, window_bounds = array<i64: 1, 1, 128>}]} {
    %c0 = arith.constant 0 : index
    %c0_0 = arith.constant 0 : index
    %c0_1 = arith.constant 0 : index
    %0 = vector.load %arg1[%c0, %c0_0, %c0_1] : memref<1x24x48xf32, #tpu.memory_space<vmem>>, vector<1x24x48xf32>
    %1 = vector.shape_cast %0 : vector<1x24x48xf32> to vector<24x48xf32>
    %c0_2 = arith.constant 0 : index
    %c0_3 = arith.constant 0 : index
    %2 = vector.load %arg2[%c0_2, %c0_3] : memref<272x32xf32, #tpu.memory_space<vmem>>, vector<48x32xf32>
    %c48 = arith.constant 48 : index
    %c0_4 = arith.constant 0 : index
    %3 = vector.load %arg2[%c48, %c0_4] : memref<272x32xf32, #tpu.memory_space<vmem>>, vector<128x32xf32>
    %c176 = arith.constant 176 : index
    %c0_5 = arith.constant 0 : index
    %4 = vector.load %arg2[%c176, %c0_5] : memref<272x32xf32, #tpu.memory_space<vmem>>, vector<64x32xf32>
    %c240 = arith.constant 240 : index
    %c0_6 = arith.constant 0 : index
    %5 = vector.load %arg2[%c240, %c0_6] : memref<272x32xf32, #tpu.memory_space<vmem>>, vector<1x32xf32>
    %c241 = arith.constant 241 : index
    %c0_7 = arith.constant 0 : index
    %6 = vector.load %arg2[%c241, %c0_7] : memref<272x32xf32, #tpu.memory_space<vmem>>, vector<1x32xf32>
    %c242 = arith.constant 242 : index
    %c0_8 = arith.constant 0 : index
    %7 = vector.load %arg2[%c242, %c0_8] : memref<272x32xf32, #tpu.memory_space<vmem>>, vector<1x32xf32>
    %c243 = arith.constant 243 : index
    %c0_9 = arith.constant 0 : index
    %8 = vector.load %arg2[%c243, %c0_9] : memref<272x32xf32, #tpu.memory_space<vmem>>, vector<1x32xf32>
    %c244 = arith.constant 244 : index
    %c0_10 = arith.constant 0 : index
    %9 = vector.load %arg2[%c244, %c0_10] : memref<272x32xf32, #tpu.memory_space<vmem>>, vector<1x32xf32>
    %c245 = arith.constant 245 : index
    %c0_11 = arith.constant 0 : index
    %10 = vector.load %arg2[%c245, %c0_11] : memref<272x32xf32, #tpu.memory_space<vmem>>, vector<1x32xf32>
    %c246 = arith.constant 246 : index
    %c0_12 = arith.constant 0 : index
    %11 = vector.load %arg2[%c246, %c0_12] : memref<272x32xf32, #tpu.memory_space<vmem>>, vector<1x32xf32>
    %c247 = arith.constant 247 : index
    %c0_13 = arith.constant 0 : index
    %12 = vector.load %arg2[%c247, %c0_13] : memref<272x32xf32, #tpu.memory_space<vmem>>, vector<1x32xf32>
    %c248 = arith.constant 248 : index
    %c0_14 = arith.constant 0 : index
    %13 = vector.load %arg2[%c248, %c0_14] : memref<272x32xf32, #tpu.memory_space<vmem>>, vector<24x32xf32>
    %c0_15 = arith.constant 0 : index
    %c0_16 = arith.constant 0 : index
    %14 = vector.load %arg3[%c0_15, %c0_16] : memref<72x64xf32, #tpu.memory_space<vmem>>, vector<32x64xf32>
    %c32 = arith.constant 32 : index
    %c0_17 = arith.constant 0 : index
    %15 = vector.load %arg3[%c32, %c0_17] : memref<72x64xf32, #tpu.memory_space<vmem>>, vector<32x64xf32>
    %c64 = arith.constant 64 : index
    %c0_18 = arith.constant 0 : index
    %16 = vector.load %arg3[%c64, %c0_18] : memref<72x64xf32, #tpu.memory_space<vmem>>, vector<1x64xf32>
    %c65 = arith.constant 65 : index
    %c0_19 = arith.constant 0 : index
    %17 = vector.load %arg3[%c65, %c0_19] : memref<72x64xf32, #tpu.memory_space<vmem>>, vector<1x64xf32>
    %cst = arith.constant dense<0.000000e+00> : vector<24x32xf32>
    %18 = tpu.matmul %1, %2, %cst {dimension_numbers = #tpu.dot_dimension_numbers<[1], [0], [0], [1], [0, 0, 1, 1], [], []>} : vector<24x48xf32>, vector<48x32xf32>, vector<24x32xf32> -> vector<24x32xf32>
    %19 = arith.addf %18, %13 : vector<24x32xf32>
    %cst_20 = arith.constant dense<0.000000e+00> : vector<24xf32>
    %20 = vector.multi_reduction <add>, %19, %cst_20 [1] : vector<24x32xf32> to vector<24xf32>
    %21 = vector.shape_cast %20 : vector<24xf32> to vector<24x1xf32>
    %cst_21 = arith.constant 3.200000e+01 : f32
    %22 = vector.broadcast %cst_21 : f32 to vector<24x1xf32>
    %23 = arith.divf %21, %22 : vector<24x1xf32>
    %24 = vector.broadcast %23 : vector<24x1xf32> to vector<24x32xf32>
    %25 = arith.subf %19, %24 : vector<24x32xf32>
    %26 = arith.mulf %25, %25 : vector<24x32xf32>
    %cst_22 = arith.constant dense<0.000000e+00> : vector<24xf32>
    %27 = vector.multi_reduction <add>, %26, %cst_22 [1] : vector<24x32xf32> to vector<24xf32>
    %28 = vector.shape_cast %27 : vector<24xf32> to vector<24x1xf32>
    %cst_23 = arith.constant 3.200000e+01 : f32
    %29 = vector.broadcast %cst_23 : f32 to vector<24x1xf32>
    %30 = arith.divf %28, %29 : vector<24x1xf32>
    %cst_24 = arith.constant 9.99999997E-7 : f32
    %31 = vector.broadcast %cst_24 : f32 to vector<24x1xf32>
    %32 = arith.addf %30, %31 : vector<24x1xf32>
    %33 = math.rsqrt %32 : vector<24x1xf32>
    %34 = vector.broadcast %33 : vector<24x1xf32> to vector<24x32xf32>
    %35 = arith.mulf %25, %34 : vector<24x32xf32>
    %36 = vector.broadcast %5 : vector<1x32xf32> to vector<24x32xf32>
    %37 = arith.mulf %35, %36 : vector<24x32xf32>
    %38 = vector.broadcast %6 : vector<1x32xf32> to vector<24x32xf32>
    %39 = arith.addf %37, %38 : vector<24x32xf32>
    %cst_25 = arith.constant dense<0.000000e+00> : vector<24x64xf32>
    %40 = tpu.matmul %39, %14, %cst_25 {dimension_numbers = #tpu.dot_dimension_numbers<[1], [0], [0], [1], [0, 0, 1, 1], [], []>} : vector<24x32xf32>, vector<32x64xf32>, vector<24x64xf32> -> vector<24x64xf32>
    %41 = vector.broadcast %16 : vector<1x64xf32> to vector<24x64xf32>
    %42 = arith.addf %40, %41 : vector<24x64xf32>
    %43 = vector.extract_strided_slice %42 {offsets = [0, 0], sizes = [1, 32], strides = [1, 1]} : vector<24x64xf32> to vector<1x32xf32>
    %44 = vector.extract_strided_slice %42 {offsets = [0, 32], sizes = [24, 32], strides = [1, 1]} : vector<24x64xf32> to vector<24x32xf32>
    %45 = tpu.iota {dimensions = array<i32: 1>} : vector<1x24xi32>
    %c17_i32 = arith.constant 17 : i32
    %46 = vector.broadcast %c17_i32 : i32 to vector<1x24xi32>
    %47 = arith.cmpi slt, %45, %46 : vector<1x24xi32>
    %48 = vector.extract_strided_slice %43 {offsets = [0, 0], sizes = [1, 8], strides = [1, 1]} : vector<1x32xf32> to vector<1x8xf32>
    %49 = vector.extract_strided_slice %44 {offsets = [0, 0], sizes = [24, 8], strides = [1, 1]} : vector<24x32xf32> to vector<24x8xf32>
    %cst_26 = arith.constant dense<0.000000e+00> : vector<1x24xf32>
    %50 = tpu.matmul %48, %49, %cst_26 {dimension_numbers = #tpu.dot_dimension_numbers<[1], [1], [0], [0], [0, 0, 1, 0], [], []>} : vector<1x8xf32>, vector<24x8xf32>, vector<1x24xf32> -> vector<1x24xf32>
    %cst_27 = arith.constant 0.353553385 : f32
    %51 = vector.broadcast %cst_27 : f32 to vector<1x24xf32>
    %52 = arith.mulf %50, %51 : vector<1x24xf32>
    %cst_28 = arith.constant -1.000000e+30 : f32
    %53 = vector.broadcast %cst_28 : f32 to vector<1x24xf32>
    %54 = arith.select %47, %52, %53 : vector<1x24xi1>, vector<1x24xf32>
    %cst_29 = arith.constant dense<0xFF800000> : vector<1xf32>
    %55 = vector.multi_reduction <maximumf>, %54, %cst_29 [1] : vector<1x24xf32> to vector<1xf32>
    %56 = vector.shape_cast %55 : vector<1xf32> to vector<1x1xf32>
    %57 = vector.broadcast %56 : vector<1x1xf32> to vector<1x24xf32>
    %58 = arith.subf %54, %57 : vector<1x24xf32>
    %59 = math.exp %58 : vector<1x24xf32>
    %cst_30 = arith.constant dense<0.000000e+00> : vector<1xf32>
    %60 = vector.multi_reduction <add>, %59, %cst_30 [1] : vector<1x24xf32> to vector<1xf32>
    %61 = vector.shape_cast %60 : vector<1xf32> to vector<1x1xf32>
    %62 = tpu.reciprocal %61 {approx = true} : vector<1x1xf32> -> vector<1x1xf32>
    %63 = vector.broadcast %62 : vector<1x1xf32> to vector<1x24xf32>
    %64 = arith.mulf %59, %63 : vector<1x24xf32>
    %cst_31 = arith.constant dense<0.000000e+00> : vector<1x32xf32>
    %65 = tpu.matmul %64, %39, %cst_31 {dimension_numbers = #tpu.dot_dimension_numbers<[1], [0], [0], [1], [0, 0, 1, 1], [], []>} : vector<1x24xf32>, vector<24x32xf32>, vector<1x32xf32> -> vector<1x32xf32>
    %66 = vector.extract_strided_slice %3 {offsets = [0, 0], sizes = [32, 32], strides = [1, 1]} : vector<128x32xf32> to vector<32x32xf32>
    %cst_32 = arith.constant dense<0.000000e+00> : vector<1x32xf32>
    %67 = tpu.matmul %65, %66, %cst_32 {dimension_numbers = #tpu.dot_dimension_numbers<[1], [0], [0], [1], [0, 0, 1, 1], [], []>} : vector<1x32xf32>, vector<32x32xf32>, vector<1x32xf32> -> vector<1x32xf32>
    %68 = arith.addf %7, %67 : vector<1x32xf32>
    %69 = vector.extract_strided_slice %43 {offsets = [0, 8], sizes = [1, 8], strides = [1, 1]} : vector<1x32xf32> to vector<1x8xf32>
    %70 = vector.extract_strided_slice %44 {offsets = [0, 8], sizes = [24, 8], strides = [1, 1]} : vector<24x32xf32> to vector<24x8xf32>
    %cst_33 = arith.constant dense<0.000000e+00> : vector<1x24xf32>
    %71 = tpu.matmul %69, %70, %cst_33 {dimension_numbers = #tpu.dot_dimension_numbers<[1], [1], [0], [0], [0, 0, 1, 0], [], []>} : vector<1x8xf32>, vector<24x8xf32>, vector<1x24xf32> -> vector<1x24xf32>
    %cst_34 = arith.constant 0.353553385 : f32
    %72 = vector.broadcast %cst_34 : f32 to vector<1x24xf32>
    %73 = arith.mulf %71, %72 : vector<1x24xf32>
    %cst_35 = arith.constant -1.000000e+30 : f32
    %74 = vector.broadcast %cst_35 : f32 to vector<1x24xf32>
    %75 = arith.select %47, %73, %74 : vector<1x24xi1>, vector<1x24xf32>
    %cst_36 = arith.constant dense<0xFF800000> : vector<1xf32>
    %76 = vector.multi_reduction <maximumf>, %75, %cst_36 [1] : vector<1x24xf32> to vector<1xf32>
    %77 = vector.shape_cast %76 : vector<1xf32> to vector<1x1xf32>
    %78 = vector.broadcast %77 : vector<1x1xf32> to vector<1x24xf32>
    %79 = arith.subf %75, %78 : vector<1x24xf32>
    %80 = math.exp %79 : vector<1x24xf32>
    %cst_37 = arith.constant dense<0.000000e+00> : vector<1xf32>
    %81 = vector.multi_reduction <add>, %80, %cst_37 [1] : vector<1x24xf32> to vector<1xf32>
    %82 = vector.shape_cast %81 : vector<1xf32> to vector<1x1xf32>
    %83 = tpu.reciprocal %82 {approx = true} : vector<1x1xf32> -> vector<1x1xf32>
    %84 = vector.broadcast %83 : vector<1x1xf32> to vector<1x24xf32>
    %85 = arith.mulf %80, %84 : vector<1x24xf32>
    %cst_38 = arith.constant dense<0.000000e+00> : vector<1x32xf32>
    %86 = tpu.matmul %85, %39, %cst_38 {dimension_numbers = #tpu.dot_dimension_numbers<[1], [0], [0], [1], [0, 0, 1, 1], [], []>} : vector<1x24xf32>, vector<24x32xf32>, vector<1x32xf32> -> vector<1x32xf32>
    %87 = vector.extract_strided_slice %3 {offsets = [32, 0], sizes = [32, 32], strides = [1, 1]} : vector<128x32xf32> to vector<32x32xf32>
    %cst_39 = arith.constant dense<0.000000e+00> : vector<1x32xf32>
    %88 = tpu.matmul %86, %87, %cst_39 {dimension_numbers = #tpu.dot_dimension_numbers<[1], [0], [0], [1], [0, 0, 1, 1], [], []>} : vector<1x32xf32>, vector<32x32xf32>, vector<1x32xf32> -> vector<1x32xf32>
    %89 = arith.addf %68, %88 : vector<1x32xf32>
    %90 = vector.extract_strided_slice %43 {offsets = [0, 16], sizes = [1, 8], strides = [1, 1]} : vector<1x32xf32> to vector<1x8xf32>
    %91 = vector.extract_strided_slice %44 {offsets = [0, 16], sizes = [24, 8], strides = [1, 1]} : vector<24x32xf32> to vector<24x8xf32>
    %cst_40 = arith.constant dense<0.000000e+00> : vector<1x24xf32>
    %92 = tpu.matmul %90, %91, %cst_40 {dimension_numbers = #tpu.dot_dimension_numbers<[1], [1], [0], [0], [0, 0, 1, 0], [], []>} : vector<1x8xf32>, vector<24x8xf32>, vector<1x24xf32> -> vector<1x24xf32>
    %cst_41 = arith.constant 0.353553385 : f32
    %93 = vector.broadcast %cst_41 : f32 to vector<1x24xf32>
    %94 = arith.mulf %92, %93 : vector<1x24xf32>
    %cst_42 = arith.constant -1.000000e+30 : f32
    %95 = vector.broadcast %cst_42 : f32 to vector<1x24xf32>
    %96 = arith.select %47, %94, %95 : vector<1x24xi1>, vector<1x24xf32>
    %cst_43 = arith.constant dense<0xFF800000> : vector<1xf32>
    %97 = vector.multi_reduction <maximumf>, %96, %cst_43 [1] : vector<1x24xf32> to vector<1xf32>
    %98 = vector.shape_cast %97 : vector<1xf32> to vector<1x1xf32>
    %99 = vector.broadcast %98 : vector<1x1xf32> to vector<1x24xf32>
    %100 = arith.subf %96, %99 : vector<1x24xf32>
    %101 = math.exp %100 : vector<1x24xf32>
    %cst_44 = arith.constant dense<0.000000e+00> : vector<1xf32>
    %102 = vector.multi_reduction <add>, %101, %cst_44 [1] : vector<1x24xf32> to vector<1xf32>
    %103 = vector.shape_cast %102 : vector<1xf32> to vector<1x1xf32>
    %104 = tpu.reciprocal %103 {approx = true} : vector<1x1xf32> -> vector<1x1xf32>
    %105 = vector.broadcast %104 : vector<1x1xf32> to vector<1x24xf32>
    %106 = arith.mulf %101, %105 : vector<1x24xf32>
    %cst_45 = arith.constant dense<0.000000e+00> : vector<1x32xf32>
    %107 = tpu.matmul %106, %39, %cst_45 {dimension_numbers = #tpu.dot_dimension_numbers<[1], [0], [0], [1], [0, 0, 1, 1], [], []>} : vector<1x24xf32>, vector<24x32xf32>, vector<1x32xf32> -> vector<1x32xf32>
    %108 = vector.extract_strided_slice %3 {offsets = [64, 0], sizes = [32, 32], strides = [1, 1]} : vector<128x32xf32> to vector<32x32xf32>
    %cst_46 = arith.constant dense<0.000000e+00> : vector<1x32xf32>
    %109 = tpu.matmul %107, %108, %cst_46 {dimension_numbers = #tpu.dot_dimension_numbers<[1], [0], [0], [1], [0, 0, 1, 1], [], []>} : vector<1x32xf32>, vector<32x32xf32>, vector<1x32xf32> -> vector<1x32xf32>
    %110 = arith.addf %89, %109 : vector<1x32xf32>
    %111 = vector.extract_strided_slice %43 {offsets = [0, 24], sizes = [1, 8], strides = [1, 1]} : vector<1x32xf32> to vector<1x8xf32>
    %112 = vector.extract_strided_slice %44 {offsets = [0, 24], sizes = [24, 8], strides = [1, 1]} : vector<24x32xf32> to vector<24x8xf32>
    %cst_47 = arith.constant dense<0.000000e+00> : vector<1x24xf32>
    %113 = tpu.matmul %111, %112, %cst_47 {dimension_numbers = #tpu.dot_dimension_numbers<[1], [1], [0], [0], [0, 0, 1, 0], [], []>} : vector<1x8xf32>, vector<24x8xf32>, vector<1x24xf32> -> vector<1x24xf32>
    %cst_48 = arith.constant 0.353553385 : f32
    %114 = vector.broadcast %cst_48 : f32 to vector<1x24xf32>
    %115 = arith.mulf %113, %114 : vector<1x24xf32>
    %cst_49 = arith.constant -1.000000e+30 : f32
    %116 = vector.broadcast %cst_49 : f32 to vector<1x24xf32>
    %117 = arith.select %47, %115, %116 : vector<1x24xi1>, vector<1x24xf32>
    %cst_50 = arith.constant dense<0xFF800000> : vector<1xf32>
    %118 = vector.multi_reduction <maximumf>, %117, %cst_50 [1] : vector<1x24xf32> to vector<1xf32>
    %119 = vector.shape_cast %118 : vector<1xf32> to vector<1x1xf32>
    %120 = vector.broadcast %119 : vector<1x1xf32> to vector<1x24xf32>
    %121 = arith.subf %117, %120 : vector<1x24xf32>
    %122 = math.exp %121 : vector<1x24xf32>
    %cst_51 = arith.constant dense<0.000000e+00> : vector<1xf32>
    %123 = vector.multi_reduction <add>, %122, %cst_51 [1] : vector<1x24xf32> to vector<1xf32>
    %124 = vector.shape_cast %123 : vector<1xf32> to vector<1x1xf32>
    %125 = tpu.reciprocal %124 {approx = true} : vector<1x1xf32> -> vector<1x1xf32>
    %126 = vector.broadcast %125 : vector<1x1xf32> to vector<1x24xf32>
    %127 = arith.mulf %122, %126 : vector<1x24xf32>
    %cst_52 = arith.constant dense<0.000000e+00> : vector<1x32xf32>
    %128 = tpu.matmul %127, %39, %cst_52 {dimension_numbers = #tpu.dot_dimension_numbers<[1], [0], [0], [1], [0, 0, 1, 1], [], []>} : vector<1x24xf32>, vector<24x32xf32>, vector<1x32xf32> -> vector<1x32xf32>
    %129 = vector.extract_strided_slice %3 {offsets = [96, 0], sizes = [32, 32], strides = [1, 1]} : vector<128x32xf32> to vector<32x32xf32>
    %cst_53 = arith.constant dense<0.000000e+00> : vector<1x32xf32>
    %130 = tpu.matmul %128, %129, %cst_53 {dimension_numbers = #tpu.dot_dimension_numbers<[1], [0], [0], [1], [0, 0, 1, 1], [], []>} : vector<1x32xf32>, vector<32x32xf32>, vector<1x32xf32> -> vector<1x32xf32>
    %131 = arith.addf %110, %130 : vector<1x32xf32>
    %132 = vector.extract_strided_slice %19 {offsets = [0, 0], sizes = [1, 32], strides = [1, 1]} : vector<24x32xf32> to vector<1x32xf32>
    %133 = arith.addf %132, %131 : vector<1x32xf32>
    %cst_54 = arith.constant dense<0.000000e+00> : vector<1xf32>
    %134 = vector.multi_reduction <add>, %133, %cst_54 [1] : vector<1x32xf32> to vector<1xf32>
    %135 = vector.shape_cast %134 : vector<1xf32> to vector<1x1xf32>
    %cst_55 = arith.constant 3.200000e+01 : f32
    %136 = vector.broadcast %cst_55 : f32 to vector<1x1xf32>
    %137 = arith.divf %135, %136 : vector<1x1xf32>
    %138 = vector.broadcast %137 : vector<1x1xf32> to vector<1x32xf32>
    %139 = arith.subf %133, %138 : vector<1x32xf32>
    %140 = arith.mulf %139, %139 : vector<1x32xf32>
    %cst_56 = arith.constant dense<0.000000e+00> : vector<1xf32>
    %141 = vector.multi_reduction <add>, %140, %cst_56 [1] : vector<1x32xf32> to vector<1xf32>
    %142 = vector.shape_cast %141 : vector<1xf32> to vector<1x1xf32>
    %cst_57 = arith.constant 3.200000e+01 : f32
    %143 = vector.broadcast %cst_57 : f32 to vector<1x1xf32>
    %144 = arith.divf %142, %143 : vector<1x1xf32>
    %cst_58 = arith.constant 9.99999997E-7 : f32
    %145 = vector.broadcast %cst_58 : f32 to vector<1x1xf32>
    %146 = arith.addf %144, %145 : vector<1x1xf32>
    %147 = math.rsqrt %146 : vector<1x1xf32>
    %148 = vector.broadcast %147 : vector<1x1xf32> to vector<1x32xf32>
    %149 = arith.mulf %139, %148 : vector<1x32xf32>
    %150 = arith.mulf %149, %8 : vector<1x32xf32>
    %151 = arith.addf %150, %9 : vector<1x32xf32>
    %cst_59 = arith.constant dense<0.000000e+00> : vector<1x64xf32>
    %152 = tpu.matmul %151, %15, %cst_59 {dimension_numbers = #tpu.dot_dimension_numbers<[1], [0], [0], [1], [0, 0, 1, 1], [], []>} : vector<1x32xf32>, vector<32x64xf32>, vector<1x64xf32> -> vector<1x64xf32>
    %153 = arith.addf %152, %17 : vector<1x64xf32>
    %154 = arith.mulf %153, %153 : vector<1x64xf32>
    %155 = arith.mulf %153, %154 : vector<1x64xf32>
    %cst_60 = arith.constant 4.471500e-02 : f32
    %156 = vector.broadcast %cst_60 : f32 to vector<1x64xf32>
    %157 = arith.mulf %156, %155 : vector<1x64xf32>
    %158 = arith.addf %153, %157 : vector<1x64xf32>
    %cst_61 = arith.constant 0.797884583 : f32
    %159 = vector.broadcast %cst_61 : f32 to vector<1x64xf32>
    %160 = arith.mulf %159, %158 : vector<1x64xf32>
    %161 = math.tanh %160 : vector<1x64xf32>
    %cst_62 = arith.constant 1.000000e+00 : f32
    %162 = vector.broadcast %cst_62 : f32 to vector<1x64xf32>
    %163 = arith.addf %162, %161 : vector<1x64xf32>
    %cst_63 = arith.constant 5.000000e-01 : f32
    %164 = vector.broadcast %cst_63 : f32 to vector<1x64xf32>
    %165 = arith.mulf %164, %163 : vector<1x64xf32>
    %166 = arith.mulf %153, %165 : vector<1x64xf32>
    %cst_64 = arith.constant dense<0.000000e+00> : vector<1x32xf32>
    %167 = tpu.matmul %166, %4, %cst_64 {dimension_numbers = #tpu.dot_dimension_numbers<[1], [0], [0], [1], [0, 0, 1, 1], [], []>} : vector<1x64xf32>, vector<64x32xf32>, vector<1x32xf32> -> vector<1x32xf32>
    %168 = arith.addf %133, %167 : vector<1x32xf32>
    %169 = arith.addf %168, %10 : vector<1x32xf32>
    %cst_65 = arith.constant dense<0.000000e+00> : vector<1xf32>
    %170 = vector.multi_reduction <add>, %169, %cst_65 [1] : vector<1x32xf32> to vector<1xf32>
    %171 = vector.shape_cast %170 : vector<1xf32> to vector<1x1xf32>
    %cst_66 = arith.constant 3.200000e+01 : f32
    %172 = vector.broadcast %cst_66 : f32 to vector<1x1xf32>
    %173 = arith.divf %171, %172 : vector<1x1xf32>
    %174 = vector.broadcast %173 : vector<1x1xf32> to vector<1x32xf32>
    %175 = arith.subf %169, %174 : vector<1x32xf32>
    %176 = arith.mulf %175, %175 : vector<1x32xf32>
    %cst_67 = arith.constant dense<0.000000e+00> : vector<1xf32>
    %177 = vector.multi_reduction <add>, %176, %cst_67 [1] : vector<1x32xf32> to vector<1xf32>
    %178 = vector.shape_cast %177 : vector<1xf32> to vector<1x1xf32>
    %cst_68 = arith.constant 3.200000e+01 : f32
    %179 = vector.broadcast %cst_68 : f32 to vector<1x1xf32>
    %180 = arith.divf %178, %179 : vector<1x1xf32>
    %cst_69 = arith.constant 9.99999997E-7 : f32
    %181 = vector.broadcast %cst_69 : f32 to vector<1x1xf32>
    %182 = arith.addf %180, %181 : vector<1x1xf32>
    %183 = math.rsqrt %182 : vector<1x1xf32>
    %184 = vector.broadcast %183 : vector<1x1xf32> to vector<1x32xf32>
    %185 = arith.mulf %175, %184 : vector<1x32xf32>
    %186 = arith.mulf %185, %11 : vector<1x32xf32>
    %187 = arith.addf %186, %12 : vector<1x32xf32>
    %188 = arith.truncf %187 : vector<1x32xf32> to vector<1x32xbf16>
    %c0_70 = arith.constant 0 : index
    %c0_71 = arith.constant 0 : index
    %189 = vector.load %arg4[%c0_70, %c0_71] : memref<552x512xbf16, #tpu.memory_space<vmem>>, vector<32x512xbf16>
    %cst_72 = arith.constant dense<0.000000e+00> : vector<1x512xf32>
    %190 = tpu.matmul %188, %189, %cst_72 {dimension_numbers = #tpu.dot_dimension_numbers<[1], [0], [0], [1], [0, 0, 1, 1], [], []>} : vector<1x32xbf16>, vector<32x512xbf16>, vector<1x512xf32> -> vector<1x512xf32>
    %c544 = arith.constant 544 : index
    %c0_73 = arith.constant 0 : index
    %191 = vector.load %arg4[%c544, %c0_73] : memref<552x512xbf16, #tpu.memory_space<vmem>>, vector<1x512xbf16>
    %192 = arith.extf %191 : vector<1x512xbf16> to vector<1x512xf32>
    %193 = arith.addf %190, %192 : vector<1x512xf32>
    %cst_74 = arith.constant 0.000000e+00 : f32
    %194 = vector.broadcast %cst_74 : f32 to vector<1x512xf32>
    %195 = arith.maximumf %193, %194 : vector<1x512xf32>
    %196 = arith.truncf %195 : vector<1x512xf32> to vector<1x512xbf16>
    %c32_75 = arith.constant 32 : index
    %c0_76 = arith.constant 0 : index
    %197 = vector.load %arg4[%c32_75, %c0_76] : memref<552x512xbf16, #tpu.memory_space<vmem>>, vector<512x512xbf16>
    %cst_77 = arith.constant dense<0.000000e+00> : vector<1x512xf32>
    %198 = tpu.matmul %196, %197, %cst_77 {dimension_numbers = #tpu.dot_dimension_numbers<[1], [0], [0], [1], [0, 0, 1, 1], [], []>} : vector<1x512xbf16>, vector<512x512xbf16>, vector<1x512xf32> -> vector<1x512xf32>
    %c545 = arith.constant 545 : index
    %c0_78 = arith.constant 0 : index
    %199 = vector.load %arg4[%c545, %c0_78] : memref<552x512xbf16, #tpu.memory_space<vmem>>, vector<1x512xbf16>
    %200 = arith.extf %199 : vector<1x512xbf16> to vector<1x512xf32>
    %201 = arith.addf %198, %200 : vector<1x512xf32>
    %cst_79 = arith.constant 0.000000e+00 : f32
    %202 = vector.broadcast %cst_79 : f32 to vector<1x512xf32>
    %203 = arith.maximumf %201, %202 : vector<1x512xf32>
    %204 = arith.truncf %203 : vector<1x512xf32> to vector<1x512xbf16>
    %c0_80 = arith.constant 0 : index
    %c0_81 = arith.constant 0 : index
    %205 = vector.load %arg5[%c0_80, %c0_81] : memref<520x128xbf16, #tpu.memory_space<vmem>>, vector<512x128xbf16>
    %cst_82 = arith.constant dense<0.000000e+00> : vector<1x128xf32>
    %206 = tpu.matmul %204, %205, %cst_82 {dimension_numbers = #tpu.dot_dimension_numbers<[1], [0], [0], [1], [0, 0, 1, 1], [], []>} : vector<1x512xbf16>, vector<512x128xbf16>, vector<1x128xf32> -> vector<1x128xf32>
    %c512 = arith.constant 512 : index
    %c0_83 = arith.constant 0 : index
    %207 = vector.load %arg5[%c512, %c0_83] : memref<520x128xbf16, #tpu.memory_space<vmem>>, vector<1x128xbf16>
    %208 = arith.extf %207 : vector<1x128xbf16> to vector<1x128xf32>
    %209 = arith.addf %206, %208 : vector<1x128xf32>
    %210 = math.tanh %209 : vector<1x128xf32>
    %c0_84 = arith.constant 0 : index
    %c0_85 = arith.constant 0 : index
    %c0_86 = arith.constant 0 : index
    %211 = vector.load %arg6[%c0_84, %c0_85, %c0_86] : memref<1x1x128xf32, #tpu.memory_space<vmem>>, vector<1x1x128xf32>
    %212 = vector.shape_cast %211 : vector<1x1x128xf32> to vector<1x128xf32>
    %213 = vector.shape_cast %210 : vector<1x128xf32> to vector<1x1x128xf32>
    tpu.vector_store %arg6[%c0_84, %c0_85, %c0_86], %213 {strides = array<i32>} : memref<1x1x128xf32, #tpu.memory_space<vmem>>, vector<1x1x128xf32>,
    return
  }
  func.func @transform_0(%arg0: i32) -> (i32, i32, i32) {
    %c0_i32 = arith.constant 0 : i32
    %c0_i32_0 = arith.constant 0 : i32
    %c0_i32_1 = arith.constant 0 : i32
    return %arg0, %c0_i32, %c0_i32_0 : i32, i32, i32
  }
  func.func @transform_1(%arg0: i32) -> (i32, i32) {
    %c0_i32 = arith.constant 0 : i32
    %c0_i32_0 = arith.constant 0 : i32
    %c0_i32_1 = arith.constant 0 : i32
    return %c0_i32, %c0_i32_0 : i32, i32
  }
  func.func @transform_2(%arg0: i32) -> (i32, i32) {
    %c0_i32 = arith.constant 0 : i32
    %c0_i32_0 = arith.constant 0 : i32
    %c0_i32_1 = arith.constant 0 : i32
    return %c0_i32, %c0_i32_0 : i32, i32
  }
  func.func @transform_3(%arg0: i32) -> (i32, i32) {
    %c0_i32 = arith.constant 0 : i32
    %c0_i32_0 = arith.constant 0 : i32
    %c0_i32_1 = arith.constant 0 : i32
    return %c0_i32, %c0_i32_0 : i32, i32
  }
  func.func @transform_4(%arg0: i32) -> (i32, i32) {
    %c0_i32 = arith.constant 0 : i32
    %c0_i32_0 = arith.constant 0 : i32
    %c0_i32_1 = arith.constant 0 : i32
    return %c0_i32, %c0_i32_0 : i32, i32
  }
  func.func @transform_5(%arg0: i32) -> (i32, i32, i32) {
    %c0_i32 = arith.constant 0 : i32
    %c0_i32_0 = arith.constant 0 : i32
    %c0_i32_1 = arith.constant 0 : i32
    return %arg0, %c0_i32, %c0_i32_0 : i32, i32, i32
  }
}

</mosaic_0001>

<bundles_post_ra>
// kernel: _fused_forward.1
= control target key start
LH: loop header
LB: loop body
LE: loop exit
PB: predicated region body
PF: predicated region fallthrough
CT: control target
= control target key end

     0   :  { %s4157_s18 = smov 0   ;;  %s5060_s0 = inlined_call_operand.vmem [shape: f32[2,24,48], index: 0, kind: input, shape index: {}]   ;;  %s5061_s1 = inlined_call_operand.vmem [shape: f32[272,32], index: 1, kind: input, shape index: {}]   ;;  %s5062_s2 = inlined_call_operand.vmem [shape: f32[72,64], index: 2, kind: input, shape index: {}]   ;;  %s5063_s3 = inlined_call_operand.vmem [shape: bf16[552,512], index: 3, kind: input, shape index: {}]   ;;  %s5064_s4 = inlined_call_operand.vmem [shape: bf16[520,128], index: 4, kind: input, shape index: {}]   ;;  %s5065_s5 = inlined_call_operand.vmem [shape: f32[2,1,128], index: 5, kind: output, shape index: {}]  }
   0x1 LB: > { %s3182_s19 = sadd.s32 4294967295, %s4114_s18   ;;  %p3186_p0 = scmp.ge.s32.totalorder %s4114_s18, 1  ;;  %s4114_s18 = sphi %s4157_s18, %s15_s18  }
   0x2   : > { %p187_p1 = scmp.lt.s32.totalorder %s4114_s18, 3 }
   0x4   : > { %p188_p2 = pnand %p3186_p0, %p187_p1 }
   0x5   : > { %v225_v0 = vld [vmem:[%s5061_s1] sm:$0xff] (!%p188_p2)  ;;  %v226_v1 = vld [vmem:[%s5061_s1 + $0x8] sm:$0xff] (!%p188_p2)  ;;  %v227_v2 = vld [vmem:[%s5061_s1 + $0x10] sm:$0xff] (!%p188_p2)  ;;  %v4116_v3 = vmov (!%p188_p2), 0.0|0.0   ;;  %vm4117_vm0 = vmmov (!%p188_p2), 0   ;;  %v4118_v6 = vmov (!%p188_p2), 0.0  }
   0x6   : > { %191 = sbr.rel (%p188_p2) target bundleno = 4978 (0x1372), region = 40  ;;  %3705 = vmatprep.subr.bf16.mxu0 (!%p188_p2), %v4116_v3  ;;  %v3706_v4 = vpack.c.bf16 (!%p188_p2), %v226_v1, %v225_v0  ;;  %v228_v5 = vld [vmem:[%s5061_s1 + $0x18] sm:$0xff] (!%p188_p2)  ;;  %3533 = vmatprep.mubr.msk.f32.mxu0 (!%p188_p2), %vm4117_vm0, %v4118_v6  ;;  %p213_p3 = scmp.lt.s32.totalorder (!%p188_p2), %s3182_s19, 1  ;;  %v229_v7 = vld [vmem:[%s5061_s1 + $0x20] sm:$0xff] (!%p188_p2)  ;;  %v230_v8 = vld [vmem:[%s5061_s1 + $0x28] sm:$0xff] (!%p188_p2)  ;;  %vm276_vm1 = vcmask (!%p188_p2), 392192  }
   0x7   : > { %3714 = vmatprep.subr.bf16.mxu1 (!%p188_p2), %v4116_v3  ;;  %3550 = vmatprep.mubr.msk.f32.mxu1 (!%p188_p2), %vm4117_vm0, %v4118_v6  ;;  %v3709_v9 = vpack.c.bf16 (!%p188_p2), %v228_v5, %v227_v2  ;;  %v3712_v10 = vpack.c.bf16 (!%p188_p2), %v230_v8, %v229_v7  ;;  %v263_v14 = vld [vmem:[%s5061_s1 + $0xf8] sm:$0xff] (!%p188_p2)  ;;  %vm366_vm2 = vcmask (!%p188_p2), 261120   ;;  %v264_v18 = vld [vmem:[%s5061_s1 + $0x100] sm:$0xff] (!%p188_p2)  ;;  %v265_v23 = vld [vmem:[%s5061_s1 + $0x108] sm:$0xff] (!%p188_p2)  ;;  %s4119_s8 = smov (!%p188_p2), 96   ;;  %vm526_vm3 = vcmask (!%p188_p2), 64512  }
   0x8   : > { %3707 = vmatpush3.bf16.msra.mxu0 (!%p188_p2), %v3706_v4  ;;  %v266_v44 = vld [vmem:[%s5062_s2] sm:$0xff] (!%p188_p2)  ;;  %v267_v45 = vld [vmem:[%s5062_s2 + $0x8] sm:$0xff] (!%p188_p2)  ;;  %v268_v47 = vld [vmem:[%s5062_s2 + $0x10] sm:$0xff] (!%p188_p2)  ;;  %vm607_vm6 = vcmask (!%p188_p2), 188416   ;;  %s4120_s9 = smov (!%p188_p2), 88   ;;  %s4122_s11 = smov (!%p188_p2), 80  }
   0x9   : > { %3708 = vmatprep.subr.bf16.mxu0 (!%p188_p2), %v4116_v3  ;;  %v3715_v46 = vpack.c.bf16 (!%p188_p2), %v267_v45, %v266_v44  ;;  %v269_v48 = vld [vmem:[%s5062_s2 + $0x18] sm:$0xff] (!%p188_p2)  ;;  %v3191_v60 = vld [vmem:[%s5061_s1 + $0xf0] ss:$0 sm:$0xff] (!%p188_p2)  ;;  %v3192_v62 = vld [vmem:[%s5061_s1 + $0xf1] ss:$0 sm:$0xff] (!%p188_p2)  ;;  %s4123_s12 = smov (!%p188_p2), 112  }
   0xa   : > { %v3718_v49 = vpack.c.bf16 (!%p188_p2), %v269_v48, %v268_v47  ;;  %vm4275_vm4 = vmpackc.low (!%p188_p2), %vm526_vm3, %vm526_vm3  ;;  %v233_v44 = vld [vmem:[%s5061_s1 + $0x40] sm:$0xff] (!%p188_p2)  ;;  %vm619_vm7 = vcmask (!%p188_p2), 195584   ;;  %s4124_s23 = smov (!%p188_p2), 72   ;;  %s4125_s24 = smov (!%p188_p2), 104   ;;  %vm1506_vm8 = vcmask (!%p188_p2), 253952   ;;  %vm1604_vm9 = vcmask (!%p188_p2), 523264  }
   0xb   : > { %3716 = vmatpush3.bf16.msra.mxu1 (!%p188_p2), %v3715_v46  ;;  %v234_v46 = vld [vmem:[%s5061_s1 + $0x48] sm:$0xff] (!%p188_p2) }
   0xc   : > { %3710 = vmatpush3.bf16.msra.mxu0 (!%p188_p2), %v3709_v9  ;;  %3717 = vmatprep.subr.bf16.mxu1 (!%p188_p2), %v4116_v3  ;;  %v3731_v47 = vpack.c.bf16 (!%p188_p2), %v234_v46, %v233_v44 }
   0xd   : > { %s5069_s19 = smov (!%p213_p3, %s3182_s19), 1  ;;  %3711 = vmatprep.subr.bf16.mxu0 %v4116_v3 }
   0xe   : > { %s3802_s7 = smul.u32 24, %s5069_s19  ;;  %s220_s15 = scalar_lea.vmem %s5065_s5, %s5069_s19 }
   0xf   : > { %3719 = vmatpush3.bf16.msra.mxu1 %v3718_v49 }
  0x10   : > { %s217_s10 = scalar_lea.vmem %s5060_s0, %s3802_s7  ;;  %3713 = vmatpush3.bf16.msra.mxu0 %v3712_v10  ;;  %3720 = vmatprep.subr.bf16.mxu1 %v4116_v3 }
  0x11   : > { %v222_v11 = vld [vmem:[%s217_s10] sm:$0xff]  ;;  %3724 = vmatprep.subr.bf16.mxu0 %v4116_v3  ;;  %v223_v12 = vld [vmem:[%s217_s10 + $0x8] sm:$0xff]  ;;  %v224_v13 = vld [vmem:[%s217_s10 + $0x10] sm:$0xff]  ;;  %s4121_s10 = smov 120  }
  0x13   : > { %3534 = vmatmul.mubr.msk.f32.vlgmr.msra.gmra.mrb[0].mxu0 %vm276_vm1, %v222_v11 }
  0x14   : > { %3536 = vmatprep.mubr.msk.f32.mxu0 %vm4117_vm0, %v4118_v6 }
  0x17   : > { %3537 = vmatmul.mubr.msk.f32.gmra.mrb[2].mxu0 %vm276_vm1, %v223_v12 }
  0x18   : > { %3539 = vmatprep.mubr.msk.f32.mxu0 %vm4117_vm0, %v4118_v6 }
  0x1b   : > { %3540 = vmatmul.mubr.msk.f32.gmra.mrb[4].mxu0 %vm276_vm1, %v224_v13 }
  0x1c   : > { %3574 = vmatprep.mubr.msk.f32.mxu0 %vm4117_vm0, %v4118_v6 }
  0xe6   : > { %v352_v15 = vpop.f32.mrb[0].mxu0 }
  0xe7   : > { %v4207_v16 = vadd.f32 %v352_v15, %v263_v14  ;;  %v3535_v17 = vpop.f32.mrb[1].mxu0  ;;  %v3193_v14 = vld [vmem:[%s5062_s2 + $0x40] ss:$0 sm:$0xff] }
  0xe9   : > { %v367_v19 = vsel %vm366_vm2, %v4207_v16, 0.0 }
  0xea   : > { %368 = vadd.xlane.f32.xlu0 %v367_v19  ;;  %v357_v20 = vpop.f32.mrb[2].mxu0 }
  0xeb   : > { %v358_v21 = vadd.f32 %v357_v20, %v264_v18  ;;  %v3538_v22 = vpop.f32.mrb[3].mxu0 }
  0xed   : > { %v370_v24 = vsel %vm366_vm2, %v358_v21, 0.0 }
  0xee   : > { %371 = vadd.xlane.f32.xlu0 %v370_v24  ;;  %v362_v25 = vpop.f32.mrb[4].mxu0 }
  0xef   : > { %v363_v26 = vadd.f32 %v362_v25, %v265_v23  ;;  %v3541_v27 = vpop.f32.mrb[5].mxu0 }
  0xf0   : > { %v242_v27 = vld [vmem:[%s5061_s1 + $0x88] sm:$0xff] }
  0xf1   : > { %v373_v28 = vsel %vm366_vm2, %v363_v26, 0.0 }
  0xf2   : > { %374 = vadd.xlane.f32.xlu1 %v373_v28 }
 0x177   : > { %v369_v29 = vpop.xlane.xlu0 %368 }
 0x178   : > { %v377_v30 = vmul.f32 0.03125, %v369_v29 }
 0x17a   : > { %v380_v31 = vsub.f32 %v4207_v16, %v377_v30  ;;  %v514_v30 = vlaneseq }
 0x17b   : > { %v372_v32 = vpop.xlane.xlu0 %371 }
 0x17c   : > { %v378_v33 = vmul.f32 0.03125, %v372_v32  ;;  %v383_v34 = vmul.f32 %v380_v31, %v380_v31 }
 0x17e   : > { %v381_v35 = vsub.f32 %v358_v21, %v378_v33  ;;  %v386_v36 = vsel %vm366_vm2, %v383_v34, 0.0 }
 0x17f   : > { %387 = vadd.xlane.f32.xlu1 %v386_v36  ;;  %v375_v37 = vpop.xlane.xlu1 %374 }
 0x180   : > { %v379_v38 = vmul.f32 0.03125, %v375_v37  ;;  %v384_v39 = vmul.f32 %v381_v35, %v381_v35 }
 0x182   : > { %v382_v40 = vsub.f32 %v363_v26, %v379_v38  ;;  %v389_v41 = vsel %vm366_vm2, %v384_v39, 0.0 }
 0x183   : > { %390 = vadd.xlane.f32.xlu0 %v389_v41 }
 0x184   : > { %v385_v42 = vmul.f32 %v382_v40, %v382_v40 }
 0x186   : > { %v392_v43 = vsel %vm366_vm2, %v385_v42, 0.0  ;;  %v231_v42 = vld [vmem:[%s5061_s1 + $0x30] sm:$0xff] }
 0x187   : > { %393 = vadd.xlane.f32.xlu1 %v392_v43  ;;  %v232_v43 = vld [vmem:[%s5061_s1 + $0x38] sm:$0xff] }
 0x188   : > { %v3728_v45 = vpack.c.bf16 %v232_v43, %v231_v42 }
 0x20c   : > { %v388_v50 = vpop.xlane.xlu1 %387 }
 0x20d   : > { %v395_v51 = vmul.f32 0.03125, %v388_v50 }
 0x20f   : > { %v398_v52 = vadd.f32 1e-06, %v395_v51 }
 0x210   : > { %v391_v53 = vpop.xlane.xlu0 %390 }
 0x211   : > { %4078 = vrsqrt.f32 %v398_v52  ;;  %v396_v54 = vmul.f32 0.03125, %v391_v53 }
 0x213   : > { %v399_v55 = vadd.f32 1e-06, %v396_v54 }
 0x214   : > { %v394_v56 = vpop.xlane.xlu1 %393 }
 0x215   : > { %4080 = vrsqrt.f32 %v399_v55  ;;  %v397_v57 = vmul.f32 0.03125, %v394_v56 }
 0x217   : > { %v400_v58 = vadd.f32 1e-06, %v397_v57 }
 0x219   : > { %4082 = vrsqrt.f32 %v400_v58 }
 0x21b   : > { %v4079_v59 = vpop.eup %4078 }
 0x21c   : > { %v404_v61 = vmul.f32 %v4079_v59, %v380_v31  ;;  %v4288_v31 = vand.u32 127, %v514_v30 }
 0x21e   : > { %v411_v63 = vmul.f32 %v3191_v60, %v404_v61  ;;  %vm516_vm5 = vcmp.lt.s32.totalorder %v4288_v31, 17  ;;  %v244_v31 = vld [vmem:[%s5061_s1 + $0x98] sm:$0xff] }
 0x21f   : > { %v4081_v0 = vpop.eup %4080 }
 0x220   : > { %v418_v1 = vadd.f32 %v3192_v62, %v411_v63  ;;  %v405_v2 = vmul.f32 %v4081_v0, %v381_v35 }
 0x222   : > { %3551 = vmatmul.mubr.msk.f32.vlgmr.msra.gmra.mrb[0].mxu1 %vm366_vm2, %v418_v1  ;;  %v412_v4 = vmul.f32 %v3191_v60, %v405_v2 }
 0x223   : > { %v4083_v5 = vpop.eup %4082  ;;  %3553 = vmatprep.mubr.msk.f32.mxu1 %vm4117_vm0, %v4118_v6 }
 0x224   : > { %v406_v7 = vmul.f32 %v4083_v5, %v382_v40  ;;  %v419_v8 = vadd.f32 %v3192_v62, %v412_v4 }
 0x226   : > { %3554 = vmatmul.mubr.msk.f32.gmra.mrb[2].mxu1 %vm366_vm2, %v419_v8  ;;  %v4247_v9 = vpack.c.bf16 %v419_v8, %v418_v1  ;;  %v413_v10 = vmul.f32 %v3191_v60, %v406_v7 }
 0x227   : > { %3556 = vmatprep.mubr.msk.f32.mxu1 %vm4117_vm0, %v4118_v6 }
 0x228   : > { %3726 = vmatpush3.bf16.msra.mxu0 %v4247_v9  ;;  %v4252_v11 = vadd.f32 %v3192_v62, %v413_v10 }
 0x229   : > { %3572 = vmatprep.subr.mxu0 %v4118_v6 }
 0x22a   : > { %3557 = vmatmul.mubr.msk.f32.gmra.mrb[4].mxu1 %vm366_vm2, %v4252_v11 }
 0x22b   : > { %3565 = vmatprep.mubr.msk.f32.mxu1 %vm4117_vm0, %v4118_v6 }
 0x22c   : > { %3573 = vmatpush3.msra.mxu0 %v4252_v11 }
 0x22d   : > { %3733 = vmatprep.subr.bf16.mxu0 %v4116_v3 }
 0x2f5   : > { %v500_v12 = vpop.f32.mrb[0].mxu1 }
 0x2f6   : > { %v3552_v13 = vpop.f32.mrb[1].mxu1  ;;  %v4264_v17 = vadd.f32 %v3193_v14, %v500_v12 }
 0x2f9   : > { %v505_v15 = vpop.f32.mrb[2].mxu1 }
 0x2fa   : > { %v506_v18 = vadd.f32 %v3193_v14, %v505_v15  ;;  %v3555_v19 = vpop.f32.mrb[3].mxu1 }
 0x2fc   : > { %v4267_v20 = vpack.i.bf16 %v506_v18, %v4264_v17 }
 0x2fd   : > { %v510_v21 = vpop.f32.mrb[4].mxu1 }
 0x2fe   : > { %v4269_v22 = vadd.f32 %v3193_v14, %v510_v21  ;;  %3823 = vrot.lane.b32.xlu0 %v4267_v20, %s4119_s8  ;;  %v3558_v23 = vpop.f32.mrb[5].mxu1 }
 0x300   : > { %524 = vrot.lane.b32.xlu1 %v4269_v22, %s4119_s8 }
 0x370   : > { %v3824_v24 = vpop.permute.xlu0 %3823 }
 0x371   : > { %v3826_v25 = vunpack.i.h.bf16 %v3824_v24  ;;  %v3825_v26 = vunpack.i.l.bf16 %v3824_v24 }
 0x372   : > { %v525_v29 = vpop.permute.xlu1 %524 }
 0x373   : > { %v3721_v28 = vpack.c.bf16 %v3826_v25, %v3825_v26 }
 0x375   : > { %3723 = vmatpush3.bf16.xpose.msk.msra.mxu1 %vm4275_vm4, %v3721_v28 }
 0x376   : > { %3563 = vmatprep.subr.mxu1 %v4118_v6 }
 0x37d   : > { %3564 = vmatpush3.xpose.msk.msra.mxu1 %vm526_vm3, %v525_v29 }
 0x37e   : > { %3727 = vmatprep.subr.bf16.mxu1 %v4116_v3 }
 0x380   : > { %3566 = vmatmul.mubr.msk.f32.vlgmr.msra.gmra.mrb[6].mxu1 %vm526_vm3, %v4264_v17 }
 0x381   : > { %3585 = vmatprep.mubr.msk.f32.mxu1 %vm4117_vm0, %v4118_v6  ;;  %3729 = vmatpush3.bf16.msra.mxu1 %v3728_v45 }
 0x382   : > { %3730 = vmatprep.subr.bf16.mxu1 %v4116_v3 }
 0x385   : > { %3732 = vmatpush3.bf16.msra.mxu1 %v3731_v47 }
 0x386   : > { %3737 = vmatprep.subr.bf16.mxu1 %v4116_v3 }
 0x453   : > { %v601_v32 = vpop.f32.mrb[6].mxu1 }
 0x454   : > { %v605_v33 = vmul.f32 0.35355338, %v601_v32  ;;  %v3567_v34 = vpop.f32.mrb[7].mxu1 }
 0x455   : > { %v235_v34 = vld [vmem:[%s5061_s1 + $0x50] sm:$0xff] }
 0x456   : > { %v606_v35 = vsel %vm516_vm5, %v605_v33, -1e+30 }
 0x457   : > { %v608_v36 = vsel %vm607_vm6, %v606_v35, -inf }
 0x458   : > { %609 = vmax.xlane.f32.xlu1 %v608_v36 }
 0x469   : > { %773 = vrot.lane.b32.xlu1 %v4269_v22, %s4120_s9 }
 0x46d   : > { %767 = vrot.lane.b32.xlu1 %v4264_v17, %s4121_s10 }
 0x471   : > { %3833 = vrot.lane.b32.xlu1 %v4267_v20, %s4122_s11 }
 0x475   : > { %1013 = vrot.lane.b32.xlu1 %v4264_v17, %s4123_s12 }
 0x4e5   : > { %v610_v37 = vpop.xlane.xlu1 %609 }
 0x4e6   : > { %v611_v38 = vsub.f32 %v606_v35, %v610_v37  ;;  %v236_v35 = vld [vmem:[%s5061_s1 + $0x58] sm:$0xff] }
 0x4e7   : > { %v3741_v37 = vpack.c.bf16 %v236_v35, %v235_v34 }
 0x4e8   : > { %v612_v39 = vmul.f32 1.442695, %v611_v38 }
 0x4e9   : > { %v774_v49 = vpop.permute.xlu1 %773 }
 0x4ea   : > { %4084 = vpow2.f32 %v612_v39  ;;  %v239_v39 = vld [vmem:[%s5061_s1 + $0x70] sm:$0xff] }
 0x4ed   : > { %v768_v54 = vpop.permute.xlu1 %767 }
 0x4f1   : > { %v3834_v57 = vpop.permute.xlu1 %3833 }
 0x4f2   : > { %v3836_v58 = vunpack.i.h.bf16 %v3834_v57  ;;  %v3835_v59 = vunpack.i.l.bf16 %v3834_v57 }
 0x4f4   : > { %v4085_v40 = vpop.eup %4084  ;;  %v3747_v60 = vpack.c.bf16 %v3836_v58, %v3835_v59 }
 0x4f5   : > { %v614_v41 = vsel %vm607_vm6, %v4085_v40, 0.0  ;;  %v1014_v62 = vpop.permute.xlu1 %1013 }
 0x4f6   : > { %615 = vadd.xlane.f32.xlu0 %v614_v41 }
 0x50c   : > { %3828 = vrot.lane.b32.xlu0 %v4267_v20, %s4120_s9 }
 0x510   : > { %1019 = vrot.lane.b32.xlu0 %v4269_v22, %s4122_s11 }
 0x583   : > { %v616_v48 = vpop.xlane.xlu0 %615 }
 0x584   : > { %4086 = vrcp.f32 %v616_v48 }
 0x587   : > { %v3829_v50 = vpop.permute.xlu0 %3828 }
 0x588   : > { %v3831_v51 = vunpack.i.h.bf16 %v3829_v50  ;;  %v3830_v52 = vunpack.i.l.bf16 %v3829_v50 }
 0x58a   : > { %v3734_v56 = vpack.c.bf16 %v3831_v51, %v3830_v52 }
 0x58b   : > { %v1020_v61 = vpop.permute.xlu0 %1019 }
 0x58e   : > { %v4087_v53 = vpop.eup %4086 }
 0x58f   : > { %v618_v55 = vmul.f32 %v4087_v53, %v4085_v40  ;;  %v240_v40 = vld [vmem:[%s5061_s1 + $0x78] sm:$0xff]  ;;  %v241_v53 = vld [vmem:[%s5061_s1 + $0x80] sm:$0xff] }
 0x590   : > { %v3754_v41 = vpack.c.bf16 %v240_v40, %v239_v39 }
 0x591   : > { %3575 = vmatmul.mubr.msk.f32.vlgmr.msra.gmra.mrb[6].mxu0 %vm619_vm7, %v618_v55  ;;  %v257_v55 = vld [vmem:[%s5061_s1 + $0xf2] sm:$0x1] }
 0x592   : > { %3736 = vmatpush3.bf16.xpose.msk.msra.mxu0 %vm4275_vm4, %v3734_v56  ;;  %3594 = vmatprep.mubr.msk.f32.mxu0 %vm4117_vm0, %v4118_v6 }
 0x593   : > { %3592 = vmatprep.subr.mxu0 %v4118_v6 }
 0x59a   : > { %3593 = vmatpush3.xpose.msk.msra.mxu0 %vm526_vm3, %v774_v49 }
 0x59b   : > { %3746 = vmatprep.subr.bf16.mxu0 %v4116_v3 }
 0x59d   : > { %3595 = vmatmul.mubr.msk.f32.vlgmr.msra.gmra.mrb[8].mxu0 %vm526_vm3, %v768_v54  ;;  %v3757_v54 = vpack.c.bf16 %v242_v27, %v241_v53  ;;  %v250_v53 = vld [vmem:[%s5061_s1 + $0xc8] sm:$0xff] }
 0x59e   : > { %3749 = vmatpush3.bf16.xpose.msk.msra.mxu0 %vm4275_vm4, %v3747_v60  ;;  %3623 = vmatprep.mubr.msk.f32.mxu0 %vm4117_vm0, %v4118_v6 }
 0x59f   : > { %3621 = vmatprep.subr.mxu0 %v4118_v6 }
 0x5a6   : > { %3622 = vmatpush3.xpose.msk.msra.mxu0 %vm526_vm3, %v1020_v61 }
 0x5a7   : > { %3753 = vmatprep.subr.bf16.mxu0 %v4116_v3 }
 0x5a9   : > { %3624 = vmatmul.mubr.msk.f32.vlgmr.msra.gmra.mrb[10].mxu0 %vm526_vm3, %v1014_v62 }
 0x5aa   : > { %3643 = vmatprep.mubr.msk.f32.mxu0 %vm4117_vm0, %v4118_v6  ;;  %3755 = vmatpush3.bf16.msra.mxu0 %v3754_v41 }
 0x5ab   : > { %3756 = vmatprep.subr.bf16.mxu0 %v4116_v3 }
 0x5ae   : > { %3758 = vmatpush3.bf16.msra.mxu0 %v3757_v54  ;;  %v251_v54 = vld [vmem:[%s5061_s1 + $0xd0] sm:$0xff] }
 0x5af   : > { %3763 = vmatprep.subr.bf16.mxu0 %v4116_v3 }
 0x664   : > { %v689_v63 = vpop.f32.mrb[6].mxu0 }
 0x665   : > { %v3576_v0 = vpop.f32.mrb[7].mxu0  ;;  %3586 = vmatmul.mubr.msk.f32.vlgmr.msra.gmra.mrb[8].mxu1 %vm366_vm2, %v689_v63 }
 0x666   : > { %3739 = vmatpush3.bf16.msra.mxu1 %v4247_v9  ;;  %3603 = vmatprep.mubr.msk.f32.mxu1 %vm4117_vm0, %v4118_v6 }
 0x667   : > { %3601 = vmatprep.subr.mxu1 %v4118_v6 }
 0x66a   : > { %3602 = vmatpush3.msra.mxu1 %v4252_v11 }
 0x66b   : > { %3740 = vmatprep.subr.bf16.mxu1 %v4116_v3 }
 0x670   : > { %v849_v1 = vpop.f32.mrb[8].mxu0 }
 0x671   : > { %v853_v2 = vmul.f32 0.35355338, %v849_v1  ;;  %v3596_v4 = vpop.f32.mrb[9].mxu0 }
 0x673   : > { %v854_v5 = vsel %vm516_vm5, %v853_v2, -1e+30 }
 0x674   : > { %v855_v7 = vsel %vm607_vm6, %v854_v5, -inf }
 0x675   : > { %856 = vmax.xlane.f32.xlu0 %v855_v7 }
 0x67c   : > { %v1095_v8 = vpop.f32.mrb[10].mxu0 }
 0x67d   : > { %v1099_v10 = vmul.f32 0.35355338, %v1095_v8  ;;  %v3625_v12 = vpop.f32.mrb[11].mxu0 }
 0x67f   : > { %v1100_v13 = vsel %vm516_vm5, %v1099_v10, -1e+30  ;;  %v245_v10 = vld [vmem:[%s5061_s1 + $0xa0] sm:$0xff] }
 0x680   : > { %v1101_v14 = vsel %vm607_vm6, %v1100_v13, -inf }
 0x681   : > { %1102 = vmax.xlane.f32.xlu0 %v1101_v14 }
 0x702   : > { %v857_v15 = vpop.xlane.xlu0 %856 }
 0x703   : > { %v858_v18 = vsub.f32 %v854_v5, %v857_v15 }
 0x705   : > { %v859_v19 = vmul.f32 1.442695, %v858_v18 }
 0x707   : > { %4088 = vpow2.f32 %v859_v19 }
 0x70e   : > { %v1103_v21 = vpop.xlane.xlu0 %1102 }
 0x70f   : > { %v1104_v23 = vsub.f32 %v1100_v13, %v1103_v21  ;;  %v246_v13 = vld [vmem:[%s5061_s1 + $0xa8] sm:$0xff] }
 0x710   : > { %v3770_v14 = vpack.c.bf16 %v246_v13, %v245_v10 }
 0x711   : > { %v4089_v24 = vpop.eup %4088  ;;  %v1105_v25 = vmul.f32 1.442695, %v1104_v23 }
 0x712   : > { %v861_v26 = vsel %vm607_vm6, %v4089_v24, 0.0 }
 0x713   : > { %4090 = vpow2.f32 %v1105_v25  ;;  %862 = vadd.xlane.f32.xlu1 %v861_v26 }
 0x71d   : > { %v4091_v28 = vpop.eup %4090 }
 0x71e   : > { %v1107_v29 = vsel %vm607_vm6, %v4091_v28, 0.0 }
 0x71f   : > { %1108 = vadd.xlane.f32.xlu0 %v1107_v29 }
 0x724   : > { %1265 = vrot.lane.b32.xlu1 %v4269_v22, %s4124_s23 }
 0x728   : > { %1259 = vrot.lane.b32.xlu1 %v4264_v17, %s4125_s24  ;;  %v237_v17 = vld [vmem:[%s5061_s1 + $0x60] sm:$0xff] }
 0x735   : > { %3838 = vrot.lane.b32.xlu0 %v4267_v20, %s4124_s23  ;;  %v238_v20 = vld [vmem:[%s5061_s1 + $0x68] sm:$0xff] }
 0x736   : > { %v3744_v38 = vpack.c.bf16 %v238_v20, %v237_v17  ;;  %v272_v20 = vld [vmem:[%s5062_s2 + $0x30] sm:$0xff] }
 0x738   : > { %v762_v30 = vpop.f32.mrb[8].mxu1 }
 0x739   : > { %v3587_v32 = vpop.f32.mrb[9].mxu1  ;;  %v766_v56 = vadd.f32 %v762_v30, %v257_v55  ;;  %v252_v55 = vld [vmem:[%s5061_s1 + $0xd8] sm:$0xff] }
 0x7a0   : > { %v863_v33 = vpop.xlane.xlu1 %862 }
 0x7a1   : > { %4092 = vrcp.f32 %v863_v33 }
 0x7a4   : > { %v1266_v51 = vpop.permute.xlu1 %1265 }
 0x7a8   : > { %v1260_v52 = vpop.permute.xlu1 %1259 }
 0x7ab   : > { %v4093_v36 = vpop.eup %4092 }
 0x7ac   : > { %v865_v22 = vmul.f32 %v4093_v36, %v4089_v24  ;;  %v1109_v42 = vpop.xlane.xlu0 %1108 }
 0x7ad   : > { %4094 = vrcp.f32 %v1109_v42 }
 0x7ae   : > { %3604 = vmatmul.mubr.msk.f32.vlgmr.msra.gmra.mrb[10].mxu1 %vm619_vm7, %v865_v22 }
 0x7af   : > { %3742 = vmatpush3.bf16.msra.mxu1 %v3741_v37  ;;  %3614 = vmatprep.mubr.msk.f32.mxu1 %vm4117_vm0, %v4118_v6 }
 0x7b0   : > { %3743 = vmatprep.subr.bf16.mxu1 %v4116_v3  ;;  %v3839_v46 = vpop.permute.xlu0 %3838 }
 0x7b1   : > { %v3841_v48 = vunpack.i.h.bf16 %v3839_v46  ;;  %v3840_v49 = vunpack.i.l.bf16 %v3839_v46  ;;  %v259_v46 = vld [vmem:[%s5061_s1 + $0xf4] sm:$0x1] }
 0x7b3   : > { %3745 = vmatpush3.bf16.msra.mxu1 %v3744_v38  ;;  %v3760_v50 = vpack.c.bf16 %v3841_v48, %v3840_v49  ;;  %v273_v38 = vld [vmem:[%s5062_s2 + $0x38] sm:$0xff]  ;;  %v247_v49 = vld [vmem:[%s5061_s1 + $0xb0] sm:$0xff] }
 0x7b4   : > { %3750 = vmatprep.subr.bf16.mxu1 %v4116_v3  ;;  %v3776_v39 = vpack.c.bf16 %v273_v38, %v272_v20  ;;  %v3886_v20 = vld [vmem:[%s5063_s3 + $0xe4] ss:$16 sps:$4 sm:$0xff]   ;;  %v3884_v38 = vld [vmem:[%s5063_s3 + $0xe0] ss:$16 sps:$4 sm:$0xff]  }
 0x7b7   : > { %v4095_v45 = vpop.eup %4094 }
 0x7b8   : > { %v1111_v47 = vmul.f32 %v4095_v45, %v4091_v28 }
 0x881   : > { %v935_v43 = vpop.f32.mrb[10].mxu1 }
 0x882   : > { %v3605_v44 = vpop.f32.mrb[11].mxu1  ;;  %3615 = vmatmul.mubr.msk.f32.vlgmr.msra.gmra.mrb[12].mxu1 %vm366_vm2, %v935_v43 }
 0x883   : > { %3752 = vmatpush3.bf16.msra.mxu1 %v4247_v9  ;;  %3632 = vmatprep.mubr.msk.f32.mxu1 %vm4117_vm0, %v4118_v6  ;;  %v258_v44 = vld [vmem:[%s5061_s1 + $0xf3] sm:$0x1] }
 0x884   : > { %3630 = vmatprep.subr.mxu1 %v4118_v6 }
 0x887   : > { %3631 = vmatpush3.msra.mxu1 %v4252_v11 }
 0x888   : > { %3633 = vmatmul.mubr.msk.f32.vlgmr.msra.gmra.mrb[14].mxu1 %vm619_vm7, %v1111_v47  ;;  %3759 = vmatprep.subr.bf16.mxu1 %v4116_v3 }
 0x889   : > { %3652 = vmatprep.mubr.msk.f32.mxu1 %vm4117_vm0, %v4118_v6 }
 0x88e   : > { %3762 = vmatpush3.bf16.xpose.msk.msra.mxu1 %vm4275_vm4, %v3760_v50  ;;  %v248_v50 = vld [vmem:[%s5061_s1 + $0xb8] sm:$0xff] }
 0x88f   : > { %3650 = vmatprep.subr.mxu1 %v4118_v6 }
 0x896   : > { %3651 = vmatpush3.xpose.msk.msra.mxu1 %vm526_vm3, %v1266_v51  ;;  %v3779_v51 = vpack.c.bf16 %v248_v50, %v247_v49  ;;  %v3922_v49 = vld [vmem:[%s5063_s3 + $0x1a4] ss:$16 sps:$4 sm:$0xff]   ;;  %v3920_v50 = vld [vmem:[%s5063_s3 + $0x1a0] ss:$16 sps:$4 sm:$0xff]  }
 0x897   : > { %3766 = vmatprep.subr.bf16.mxu1 %v4116_v3 }
 0x899   : > { %3653 = vmatmul.mubr.msk.f32.vlgmr.msra.gmra.mrb[16].mxu1 %vm526_vm3, %v1260_v52  ;;  %v249_v52 = vld [vmem:[%s5061_s1 + $0xc0] sm:$0xff] }
 0x89a   : > { %3672 = vmatprep.mubr.msk.f32.mxu1 %vm4117_vm0, %v4118_v6  ;;  %v3782_v27 = vpack.c.bf16 %v250_v53, %v249_v52  ;;  %v3926_v52 = vld [vmem:[%s5063_s3 + $0x1c0] ss:$16 sps:$4 sm:$0xff]   ;;  %v3934_v53 = vld [vmem:[%s5063_s3 + $0x1e4] ss:$16 sps:$4 sm:$0xff]  }
 0x955   : > { %v1008_v57 = vpop.f32.mrb[12].mxu1 }
 0x956   : > { %v1012_v58 = vadd.f32 %v1008_v57, %v766_v56  ;;  %v3616_v59 = vpop.f32.mrb[13].mxu1  ;;  %v3785_v56 = vpack.c.bf16 %v252_v55, %v251_v54  ;;  %v253_v57 = vld [vmem:[%s5061_s1 + $0xe0] sm:$0xff] }
 0x95b   : > { %v1181_v60 = vpop.f32.mrb[14].mxu1 }
 0x95c   : > { %v3634_v61 = vpop.f32.mrb[15].mxu1  ;;  %3644 = vmatmul.mubr.msk.f32.vlgmr.msra.gmra.mrb[12].mxu0 %vm366_vm2, %v1181_v60  ;;  %v275_v60 = vld [vmem:[%s5062_s2 + $0x41] sm:$0x1] }
 0x95d   : > { %3765 = vmatpush3.bf16.msra.mxu0 %v4247_v9  ;;  %3661 = vmatprep.mubr.msk.f32.mxu0 %vm4117_vm0, %v4118_v6 }
 0x95e   : > { %3659 = vmatprep.subr.mxu0 %v4118_v6 }
 0x961   : > { %3660 = vmatpush3.msra.mxu0 %v4252_v11  ;;  %v243_v11 = vld [vmem:[%s5061_s1 + $0x90] sm:$0xff] }
 0x962   : > { %3772 = vmatprep.subr.bf16.mxu0 %v4116_v3  ;;  %v3767_v12 = vpack.c.bf16 %v244_v31, %v243_v11  ;;  %v260_v31 = vld [vmem:[%s5061_s1 + $0xf5] sm:$0x1] }
 0x964   : > { %3768 = vmatpush3.bf16.msra.mxu1 %v3767_v12 }
 0x965   : > { %3769 = vmatprep.subr.bf16.mxu1 %v4116_v3 }
 0x968   : > { %3771 = vmatpush3.bf16.msra.mxu1 %v3770_v14 }
 0x969   : > { %3778 = vmatprep.subr.bf16.mxu1 %v4116_v3 }
 0x96c   : > { %v1341_v62 = vpop.f32.mrb[16].mxu1 }
 0x96d   : > { %v1345_v63 = vmul.f32 0.35355338, %v1341_v62  ;;  %v3654_v0 = vpop.f32.mrb[17].mxu1 }
 0x96f   : > { %v1346_v1 = vsel %vm516_vm5, %v1345_v63, -1e+30 }
 0x970   : > { %v1347_v2 = vsel %vm607_vm6, %v1346_v1, -inf }
 0x971   : > { %1348 = vmax.xlane.f32.xlu1 %v1347_v2 }
 0x9fe   : > { %v1349_v4 = vpop.xlane.xlu1 %1348 }
 0x9ff   : > { %v1350_v9 = vsub.f32 %v1346_v1, %v1349_v4 }
 0xa01   : > { %v1351_v5 = vmul.f32 1.442695, %v1350_v9 }
 0xa03   : > { %4096 = vpow2.f32 %v1351_v5 }
 0xa0d   : > { %v4097_v7 = vpop.eup %4096 }
 0xa0e   : > { %v1353_v8 = vsel %vm607_vm6, %v4097_v7, 0.0 }
 0xa0f   : > { %1354 = vadd.xlane.f32.xlu0 %v1353_v8 }
 0xa2f   : > { %v1254_v15 = vpop.f32.mrb[12].mxu0 }
 0xa30   : > { %v1258_v18 = vadd.f32 %v1254_v15, %v1012_v58  ;;  %v3645_v19 = vpop.f32.mrb[13].mxu0  ;;  %v254_v58 = vld [vmem:[%s5061_s1 + $0xe8] sm:$0xff] }
 0xa31   : > { %v3788_v59 = vpack.c.bf16 %v254_v58, %v253_v57  ;;  %v261_v58 = vld [vmem:[%s5061_s1 + $0xf6] sm:$0x1] }
 0xa9c   : > { %v1355_v21 = vpop.xlane.xlu0 %1354 }
 0xa9d   : > { %4098 = vrcp.f32 %v1355_v21 }
 0xaa7   : > { %v4099_v23 = vpop.eup %4098 }
 0xaa8   : > { %v1357_v24 = vmul.f32 %v4099_v23, %v4097_v7 }
 0xaaa   : > { %3662 = vmatmul.mubr.msk.f32.vlgmr.msra.gmra.mrb[14].mxu0 %vm619_vm7, %v1357_v24  ;;  %v3844_v24 = vld [vmem:[%s5063_s3 + $0x4] ss:$16 sps:$4 sm:$0xff]  }
 0xaab   : > { %3683 = vmatprep.mubr.msk.f32.mxu0 %vm4117_vm0, %v4118_v6 }
 0xb7d   : > { %v1427_v25 = vpop.f32.mrb[14].mxu0 }
 0xb7e   : > { %v3663_v26 = vpop.f32.mrb[15].mxu0  ;;  %3673 = vmatmul.mubr.msk.f32.vlgmr.msra.gmra.mrb[18].mxu1 %vm366_vm2, %v1427_v25  ;;  %v3842_v25 = vld [vmem:[%s5063_s3] ss:$16 sps:$4 sm:$0xff]  }
 0xb7f   : > { %3702 = vmatprep.mubr.msk.f32.mxu1 %vm4117_vm0, %v4118_v6  ;;  %v270_v6 = vld [vmem:[%s5062_s2 + $0x20] sm:$0xff]  ;;  %3780 = vmatpush3.bf16.msra.mxu1 %v3779_v51 }
 0xb80   : > { %3781 = vmatprep.subr.bf16.mxu1 %v4116_v3  ;;  %v3845_v26 = vld [vmem:[%s5063_s3 + $0x20] ss:$16 sps:$4 sm:$0xff]   ;;  %v3928_v51 = vld [vmem:[%s5063_s3 + $0x1c4] ss:$16 sps:$4 sm:$0xff]  }
 0xb83   : > { %3783 = vmatpush3.bf16.msra.mxu1 %v3782_v27  ;;  %v3932_v27 = vld [vmem:[%s5063_s3 + $0x1e0] ss:$16 sps:$4 sm:$0xff]  }
 0xb84   : > { %3784 = vmatprep.subr.bf16.mxu1 %v4116_v3 }
 0xb87   : > { %3786 = vmatpush3.bf16.msra.mxu1 %v3785_v56 }
 0xb88   : > { %3787 = vmatprep.subr.bf16.mxu1 %v4116_v3 }
 0xb8b   : > { %3789 = vmatpush3.bf16.msra.mxu1 %v3788_v59 }
 0xc51   : > { %v1500_v28 = vpop.f32.mrb[18].mxu1 }
 0xc52   : > { %v1504_v29 = vadd.f32 %v1500_v28, %v1258_v18  ;;  %v3674_v30 = vpop.f32.mrb[19].mxu1  ;;  %v3847_v28 = vld [vmem:[%s5063_s3 + $0x24] ss:$16 sps:$4 sm:$0xff]  }
 0xc53   : > { %v3850_v30 = vld [vmem:[%s5063_s3 + $0xc] ss:$16 sps:$4 sm:$0xff]  }
 0xc54   : > { %v4436_v32 = vadd.f32 %v1504_v29, %v4207_v16  ;;  %v271_v16 = vld [vmem:[%s5062_s2 + $0x28] sm:$0xff]  ;;  %v4126_v29 = vmov 0  }
 0xc55   : > { %v3773_v17 = vpack.c.bf16 %v271_v16, %v270_v6  ;;  %v3872_v6 = vld [vmem:[%s5063_s3 + $0xa0] ss:$16 sps:$4 sm:$0xff]   ;;  %v3880_v16 = vld [vmem:[%s5063_s3 + $0xc4] ss:$16 sps:$4 sm:$0xff]  }
 0xc56   : > { %v1507_v33 = vsel %vm1506_vm8, %v4436_v32, 0.0 }
 0xc57   : > { %1508 = vadd.xlane.f32.xlu0 %v1507_v33  ;;  %3774 = vmatpush3.bf16.msra.mxu0 %v3773_v17  ;;  %v3856_v33 = vld [vmem:[%s5063_s3 + $0x44] ss:$16 sps:$4 sm:$0xff]   ;;  %v3878_v17 = vld [vmem:[%s5063_s3 + $0xc0] ss:$16 sps:$4 sm:$0xff]  }
 0xc58   : > { %3775 = vmatprep.subr.bf16.mxu0 %v4116_v3  ;;  %2623 = vmatprep.subr.bf16.mxu1 %v3856_v33  ;;  %v3931_v33 = vld [vmem:[%s5063_s3 + $0x1cc] ss:$16 sps:$4 sm:$0xff]  }
 0xc5b   : > { %3777 = vmatpush3.bf16.msra.mxu0 %v3776_v39  ;;  %v3892_v39 = vld [vmem:[%s5063_s3 + $0x104] ss:$16 sps:$4 sm:$0xff]  }
 0xc5c   : > { %1753 = vmatprep.subr.bf16.mxu0 %v3844_v24  ;;  %v3905_v24 = vld [vmem:[%s5063_s3 + $0x148] ss:$16 sps:$4 sm:$0xff]  }
 0xce4   : > { %v1509_v34 = vpop.xlane.xlu0 %1508 }
 0xce5   : > { %v1510_v35 = vmul.f32 0.03125, %v1509_v34  ;;  %v3862_v34 = vld [vmem:[%s5063_s3 + $0x64] ss:$16 sps:$4 sm:$0xff]  }
 0xce7   : > { %v1511_v36 = vsub.f32 %v4436_v32, %v1510_v35  ;;  %v3860_v35 = vld [vmem:[%s5063_s3 + $0x60] ss:$16 sps:$4 sm:$0xff]  }
 0xce9   : > { %v1512_v37 = vmul.f32 %v1511_v36, %v1511_v36 }
 0xceb   : > { %v1513_v22 = vsel %vm1506_vm8, %v1512_v37, 0.0  ;;  %v3866_v37 = vld [vmem:[%s5063_s3 + $0x80] ss:$16 sps:$4 sm:$0xff]  }
 0xcec   : > { %1514 = vadd.xlane.f32.xlu0 %v1513_v22  ;;  %v3874_v22 = vld [vmem:[%s5063_s3 + $0xa4] ss:$16 sps:$4 sm:$0xff]  }
 0xd79   : > { %v1515_v40 = vpop.xlane.xlu0 %1514 }
 0xd7a   : > { %v1516_v41 = vmul.f32 0.03125, %v1515_v40  ;;  %v3890_v40 = vld [vmem:[%s5063_s3 + $0x100] ss:$16 sps:$4 sm:$0xff]  }
 0xd7c   : > { %v1517_v42 = vadd.f32 1e-06, %v1516_v41  ;;  %v3898_v41 = vld [vmem:[%s5063_s3 + $0x124] ss:$16 sps:$4 sm:$0xff]  }
 0xd7e   : > { %4100 = vrsqrt.f32 %v1517_v42  ;;  %v3896_v42 = vld [vmem:[%s5063_s3 + $0x120] ss:$16 sps:$4 sm:$0xff]  }
 0xd88   : > { %v4101_v43 = vpop.eup %4100 }
 0xd89   : > { %v1519_v45 = vmul.f32 %v4101_v43, %v1511_v36  ;;  %v3868_v36 = vld [vmem:[%s5063_s3 + $0x84] ss:$16 sps:$4 sm:$0xff]  }
 0xd8a   : > { %v3904_v43 = vld [vmem:[%s5063_s3 + $0x144] ss:$16 sps:$4 sm:$0xff]  }
 0xd8b   : > { %v1520_v47 = vmul.f32 %v1519_v45, %v258_v44  ;;  %v3902_v44 = vld [vmem:[%s5063_s3 + $0x140] ss:$16 sps:$4 sm:$0xff]   ;;  %v3910_v45 = vld [vmem:[%s5063_s3 + $0x164] ss:$16 sps:$4 sm:$0xff]  }
 0xd8d   : > { %v1521_v48 = vadd.f32 %v1520_v47, %v259_v46  ;;  %v3908_v46 = vld [vmem:[%s5063_s3 + $0x160] ss:$16 sps:$4 sm:$0xff]   ;;  %v3916_v47 = vld [vmem:[%s5063_s3 + $0x184] ss:$16 sps:$4 sm:$0xff]  }
 0xd8f   : > { %3684 = vmatmul.mubr.msk.f32.vlgmr.msra.gmra.mrb[16].mxu0 %vm366_vm2, %v1521_v48  ;;  %v3914_v48 = vld [vmem:[%s5063_s3 + $0x180] ss:$16 sps:$4 sm:$0xff]  }
 0xd90   : > { %1754 = vmatpush1.bf16.msra.mxu0 %v3842_v25  ;;  %1785 = vmatprep.mubr.bf16.mxu0 %v4126_v29  ;;  %v3913_v25 = vld [vmem:[%s5063_s3 + $0x16c] ss:$16 sps:$4 sm:$0xff]  }
 0xd91   : > { %1755 = vmatprep.subr.bf16.mxu0 %v3847_v28  ;;  %v3919_v28 = vld [vmem:[%s5063_s3 + $0x18c] ss:$16 sps:$4 sm:$0xff]  }
 0xd94   : > { %1756 = vmatpush1.bf16.msra.mxu0 %v3845_v26  ;;  %v3911_v26 = vld [vmem:[%s5063_s3 + $0x168] ss:$16 sps:$4 sm:$0xff]  }
 0xd95   : > { %1794 = vmatprep.subr.bf16.mxu0 %v3850_v30  ;;  %v3925_v30 = vld [vmem:[%s5063_s3 + $0x1ac] ss:$16 sps:$4 sm:$0xff]  }
 0xe62   : > { %v1591_v61 = vpop.f32.mrb[16].mxu0 }
 0xe63   : > { %v1592_v62 = vadd.f32 %v1591_v61, %v275_v60  ;;  %v3685_v63 = vpop.f32.mrb[17].mxu0  ;;  %v262_v60 = vld [vmem:[%s5061_s1 + $0xf7] sm:$0x1] }
 0xe64   : > { %v3848_v63 = vld [vmem:[%s5063_s3 + $0x8] ss:$16 sps:$4 sm:$0xff]  }
 0xe65   : > { %v1595_v0 = vmul.f32 %v1592_v62, %v1592_v62 }
 0xe67   : > { %v1596_v1 = vmul.f32 %v1595_v0, %v1592_v62 }
 0xe69   : > { %v1597_v3 = vmul.f32 0.044715, %v1596_v1  ;;  %v3853_v1 = vld [vmem:[%s5063_s3 + $0x2c] ss:$16 sps:$4 sm:$0xff]  }
 0xe6b   : > { %v1598_v2 = vadd.f32 %v1597_v3, %v1592_v62  ;;  %v3851_v3 = vld [vmem:[%s5063_s3 + $0x28] ss:$16 sps:$4 sm:$0xff]  }
 0xe6d   : > { %v1599_v4 = vmul.f32 0.7978846, %v1598_v2  ;;  %v3859_v2 = vld [vmem:[%s5063_s3 + $0x4c] ss:$16 sps:$4 sm:$0xff]  }
 0xe6f   : > { %4102 = vtanh.f32 %v1599_v4  ;;  %v3857_v4 = vld [vmem:[%s5063_s3 + $0x48] ss:$16 sps:$4 sm:$0xff]  }
 0xe79   : > { %v4103_v9 = vpop.eup %4102 }
 0xe7a   : > { %v1601_v5 = vadd.f32 1.0, %v4103_v9  ;;  %v3865_v9 = vld [vmem:[%s5063_s3 + $0x6c] ss:$16 sps:$4 sm:$0xff]  }
 0xe7c   : > { %v1602_v7 = vmul.f32 0.5, %v1601_v5  ;;  %v3863_v5 = vld [vmem:[%s5063_s3 + $0x68] ss:$16 sps:$4 sm:$0xff]  }
 0xe7e   : > { %v1603_v8 = vmul.f32 %v1602_v7, %v1592_v62  ;;  %v3871_v7 = vld [vmem:[%s5063_s3 + $0x8c] ss:$16 sps:$4 sm:$0xff]  }
 0xe80   : > { %3703 = vmatmul.mubr.msk.f32.vlgmr.msra.gmra.mrb[20].mxu1 %vm1604_vm9, %v1603_v8  ;;  %v3869_v8 = vld [vmem:[%s5063_s3 + $0x88] ss:$16 sps:$4 sm:$0xff]  }
 0xf53   : > { %v1674_v11 = vpop.f32.mrb[20].mxu1 }
 0xf54   : > { %v1678_v10 = vadd.f32 %v1674_v11, %v4436_v32  ;;  %v3704_v12 = vpop.f32.mrb[21].mxu1  ;;  %v3854_v32 = vld [vmem:[%s5063_s3 + $0x40] ss:$16 sps:$4 sm:$0xff]   ;;  %v3877_v11 = vld [vmem:[%s5063_s3 + $0xac] ss:$16 sps:$4 sm:$0xff]  }
 0xf55   : > { %2624 = vmatpush1.bf16.msra.mxu1 %v3854_v32  ;;  %v3881_v12 = vld [vmem:[%s5063_s3 + $0xc8] ss:$16 sps:$4 sm:$0xff]  }
 0xf56   : > { %v1679_v13 = vadd.f32 %v1678_v10, %v260_v31  ;;  %2625 = vmatprep.subr.bf16.mxu1 %v3862_v34  ;;  %v3875_v31 = vld [vmem:[%s5063_s3 + $0xa8] ss:$16 sps:$4 sm:$0xff]   ;;  %v3883_v10 = vld [vmem:[%s5063_s3 + $0xcc] ss:$16 sps:$4 sm:$0xff]  }
 0xf57   : > { %v3923_v32 = vld [vmem:[%s5063_s3 + $0x1a8] ss:$16 sps:$4 sm:$0xff]  }
 0xf58   : > { %v1680_v14 = vsel %vm1506_vm8, %v1679_v13, 0.0  ;;  %v3929_v34 = vld [vmem:[%s5063_s3 + $0x1c8] ss:$16 sps:$4 sm:$0xff]  }
 0xf59   : > { %1681 = vadd.xlane.f32.xlu1 %v1680_v14  ;;  %2626 = vmatpush1.bf16.msra.mxu1 %v3860_v35  ;;  %v3887_v14 = vld [vmem:[%s5063_s3 + $0xe8] ss:$16 sps:$4 sm:$0xff]   ;;  %v3937_v35 = vld [vmem:[%s5063_s3 + $0x1ec] ss:$16 sps:$4 sm:$0xff]  }
 0xf5a   : > { %2627 = vmatprep.subr.bf16.mxu1 %v3868_v36  ;;  %v3935_v36 = vld [vmem:[%s5063_s3 + $0x1e8] ss:$16 sps:$4 sm:$0xff]  }
 0xf5d   : > { %2628 = vmatpush1.bf16.msra.mxu1 %v3866_v37  ;;  %v3940_v37 = vld [vmem:[%s5063_s3 + $0x204] ss:$16 sps:$4 sm:$0xff]  }
 0xf5e   : > { %2629 = vmatprep.subr.bf16.mxu1 %v3874_v22  ;;  %v3943_v22 = vld [vmem:[%s5063_s3 + $0x20c] ss:$16 sps:$4 sm:$0xff]  }
 0xf61   : > { %2630 = vmatpush1.bf16.msra.mxu1 %v3872_v6  ;;  %v3938_v6 = vld [vmem:[%s5063_s3 + $0x200] ss:$16 sps:$4 sm:$0xff]  }
 0xf62   : > { %2631 = vmatprep.subr.bf16.mxu1 %v3880_v16  ;;  %v3941_v16 = vld [vmem:[%s5063_s3 + $0x208] ss:$16 sps:$4 sm:$0xff]  }
 0xf65   : > { %2632 = vmatpush1.bf16.msra.mxu1 %v3878_v17  ;;  %v3946_v17 = vld [vmem:[%s5063_s3 + $0x224] ss:$16 sps:$4 sm:$0xff]  }
 0xf66   : > { %2633 = vmatprep.subr.bf16.mxu1 %v3886_v20  ;;  %v3949_v20 = vld [vmem:[%s5063_s3 + $0x22c] ss:$16 sps:$4 sm:$0xff]  }
 0xf69   : > { %2634 = vmatpush1.bf16.msra.mxu1 %v3884_v38  ;;  %v3944_v38 = vld [vmem:[%s5063_s3 + $0x220] ss:$16 sps:$4 sm:$0xff]  }
 0xf6a   : > { %2635 = vmatprep.subr.bf16.mxu1 %v3892_v39  ;;  %v3947_v39 = vld [vmem:[%s5063_s3 + $0x228] ss:$16 sps:$4 sm:$0xff]  }
 0xf6d   : > { %2636 = vmatpush1.bf16.msra.mxu1 %v3890_v40  ;;  %v3952_v40 = vld [vmem:[%s5063_s3 + $0x244] ss:$16 sps:$4 sm:$0xff]  }
 0xf6e   : > { %2637 = vmatprep.subr.bf16.mxu1 %v3898_v41  ;;  %v3955_v41 = vld [vmem:[%s5063_s3 + $0x24c] ss:$16 sps:$4 sm:$0xff]  }
 0xf71   : > { %2638 = vmatpush1.bf16.msra.mxu1 %v3896_v42  ;;  %v4738_v42 = vld [vmem:[%s5063_s3 + $0x440] sm:$0x11] }
 0xf72   : > { %2639 = vmatprep.subr.bf16.mxu1 %v3904_v43  ;;  %v1706_v43 = vunpack.c.l.bf16 %v4738_v42 }
 0xf75   : > { %2640 = vmatpush1.bf16.msra.mxu1 %v3902_v44  ;;  %v1707_v44 = vunpack.c.h.bf16 %v4738_v42 }
 0xf76   : > { %2641 = vmatprep.subr.bf16.mxu1 %v3910_v45 }
 0xf79   : > { %2642 = vmatpush1.bf16.msra.mxu1 %v3908_v46 }
 0xf7a   : > { %2643 = vmatprep.subr.bf16.mxu1 %v3916_v47 }
 0xf7d   : > { %2644 = vmatpush1.bf16.msra.mxu1 %v3914_v48 }
 0xf7e   : > { %2645 = vmatprep.subr.bf16.mxu1 %v3922_v49 }
 0xf81   : > { %2646 = vmatpush1.bf16.msra.mxu1 %v3920_v50 }
 0xf82   : > { %2647 = vmatprep.subr.bf16.mxu1 %v3928_v51 }
 0xf85   : > { %2648 = vmatpush1.bf16.msra.mxu1 %v3926_v52  ;;  %v4749_v52 = vld [vmem:[%s5063_s3 + $0x448] sm:$0x11] }
 0xf86   : > { %2649 = vmatprep.subr.bf16.mxu1 %v3934_v53 }
 0xf89   : > { %2650 = vmatpush1.bf16.msra.mxu1 %v3932_v27 }
 0xf8a   : > { %2651 = vmatprep.subr.bf16.mxu1 %v3940_v37  ;;  %v3998_v37 = vld [vmem:[%s5063_s3 + $0x340] ss:$16 sps:$4 sm:$0xff]  }
 0xf8d   : > { %2652 = vmatpush1.bf16.msra.mxu1 %v3938_v6  ;;  %v4006_v6 = vld [vmem:[%s5063_s3 + $0x364] ss:$16 sps:$4 sm:$0xff]  }
 0xf8e   : > { %2653 = vmatprep.subr.bf16.mxu1 %v3946_v17  ;;  %v4004_v17 = vld [vmem:[%s5063_s3 + $0x360] ss:$16 sps:$4 sm:$0xff]  }
 0xf91   : > { %2654 = vmatpush1.bf16.msra.mxu1 %v3944_v38  ;;  %v4012_v38 = vld [vmem:[%s5063_s3 + $0x384] ss:$16 sps:$4 sm:$0xff]  }
 0xf92   : > { %2664 = vmatprep.subr.bf16.mxu1 %v3952_v40  ;;  %v4010_v40 = vld [vmem:[%s5063_s3 + $0x380] ss:$16 sps:$4 sm:$0xff]  }
 0xfe6   : > { %v1682_v15 = vpop.xlane.xlu1 %1681 }
 0xfe7   : > { %v1683_v18 = vmul.f32 0.03125, %v1682_v15  ;;  %v3895_v15 = vld [vmem:[%s5063_s3 + $0x10c] ss:$16 sps:$4 sm:$0xff]  }
 0xfe9   : > { %v4497_v19 = vsub.f32 %v1679_v13, %v1683_v18  ;;  %v3889_v13 = vld [vmem:[%s5063_s3 + $0xec] ss:$16 sps:$4 sm:$0xff]   ;;  %v3893_v18 = vld [vmem:[%s5063_s3 + $0x108] ss:$16 sps:$4 sm:$0xff]  }
 0xfeb   : > { %v1685_v21 = vmul.f32 %v4497_v19, %v4497_v19 }
 0xfed   : > { %v1686_v23 = vsel %vm1506_vm8, %v1685_v21, 0.0  ;;  %v3899_v21 = vld [vmem:[%s5063_s3 + $0x128] ss:$16 sps:$4 sm:$0xff]  }
 0xfee   : > { %1687 = vadd.xlane.f32.xlu0 %v1686_v23  ;;  %v3907_v23 = vld [vmem:[%s5063_s3 + $0x14c] ss:$16 sps:$4 sm:$0xff]  }
0x107b   : > { %v1688_v54 = vpop.xlane.xlu0 %1687 }
0x107c   : > { %v1689_v55 = vmul.f32 0.03125, %v1688_v54  ;;  %v3950_v54 = vld [vmem:[%s5063_s3 + $0x240] ss:$16 sps:$4 sm:$0xff]  }
0x107e   : > { %v1690_v56 = vadd.f32 1e-06, %v1689_v55  ;;  %v3953_v55 = vld [vmem:[%s5063_s3 + $0x248] ss:$16 sps:$4 sm:$0xff]  }
0x1080   : > { %4104 = vrsqrt.f32 %v1690_v56  ;;  %v1709_v56 = vunpack.c.h.bf16 %v4749_v52 }
0x108a   : > { %v4105_v57 = vpop.eup %4104 }
0x108b   : > { %v1692_v59 = vmul.f32 %v4105_v57, %v4497_v19  ;;  %v3901_v19 = vld [vmem:[%s5063_s3 + $0x12c] ss:$16 sps:$4 sm:$0xff]  }
0x108d   : > { %v1693_v61 = vmul.f32 %v1692_v59, %v261_v58  ;;  %v3958_v58 = vld [vmem:[%s5063_s3 + $0x264] ss:$16 sps:$4 sm:$0xff]   ;;  %v3961_v59 = vld [vmem:[%s5063_s3 + $0x26c] ss:$16 sps:$4 sm:$0xff]  }
0x108f   : > { %v1694_v62 = vadd.f32 %v1693_v61, %v262_v60 }
0x1091   : > { %v1695_v0 = vpack.c.bf16 %v1694_v62, %v1694_v62 }
0x1093   : > { %3231 = vmatmul.mubr.msk.bf16.vlgmr.msra.gmra.mrb[20].mxu0 %vm366_vm2, %v1695_v0 }
0x1094   : > { %1795 = vmatpush1.bf16.msra.mxu0 %v3848_v63  ;;  %1826 = vmatprep.mubr.bf16.mxu0 %v4126_v29  ;;  %v3917_v29 = vld [vmem:[%s5063_s3 + $0x188] ss:$16 sps:$4 sm:$0xff]  }
0x1095   : > { %1796 = vmatprep.subr.bf16.mxu0 %v3853_v1  ;;  %v3959_v1 = vld [vmem:[%s5063_s3 + $0x268] ss:$16 sps:$4 sm:$0xff]  }
0x1098   : > { %1797 = vmatpush1.bf16.msra.mxu0 %v3851_v3 }
0x1099   : > { %2705 = vmatprep.subr.bf16.mxu0 %v3859_v2  ;;  %v3964_v2 = vld [vmem:[%s5063_s3 + $0x284] ss:$16 sps:$4 sm:$0xff]  }
0x109b   : > { %3232 = vmatmul.mubr.msk.bf16.vlgmr.msra.gmra.mrb[24].mxu0 %vm366_vm2, %v1695_v0  ;;  %v3956_v0 = vld [vmem:[%s5063_s3 + $0x260] ss:$16 sps:$4 sm:$0xff]  }
0x109c   : > { %2706 = vmatpush1.bf16.msra.mxu0 %v3857_v4  ;;  %v3967_v4 = vld [vmem:[%s5063_s3 + $0x28c] ss:$16 sps:$4 sm:$0xff]  }
0x109d   : > { %2707 = vmatprep.subr.bf16.mxu0 %v3865_v9 }
0x10a0   : > { %2708 = vmatpush1.bf16.msra.mxu0 %v3863_v5 }
0x10a1   : > { %2709 = vmatprep.subr.bf16.mxu0 %v3871_v7  ;;  %v3962_v7 = vld [vmem:[%s5063_s3 + $0x280] ss:$16 sps:$4 sm:$0xff]  }
0x10a4   : > { %2710 = vmatpush1.bf16.msra.mxu0 %v3869_v8  ;;  %v3965_v8 = vld [vmem:[%s5063_s3 + $0x288] ss:$16 sps:$4 sm:$0xff]  }
0x10a5   : > { %2711 = vmatprep.subr.bf16.mxu0 %v3877_v11  ;;  %v3970_v11 = vld [vmem:[%s5063_s3 + $0x2a4] ss:$16 sps:$4 sm:$0xff]  }
0x10a8   : > { %2712 = vmatpush1.bf16.msra.mxu0 %v3875_v31  ;;  %v3973_v31 = vld [vmem:[%s5063_s3 + $0x2ac] ss:$16 sps:$4 sm:$0xff]  }
0x10a9   : > { %2713 = vmatprep.subr.bf16.mxu0 %v3883_v10  ;;  %v3968_v10 = vld [vmem:[%s5063_s3 + $0x2a0] ss:$16 sps:$4 sm:$0xff]  }
0x10ac   : > { %2714 = vmatpush1.bf16.msra.mxu0 %v3881_v12  ;;  %v3971_v12 = vld [vmem:[%s5063_s3 + $0x2a8] ss:$16 sps:$4 sm:$0xff]  }
0x10ad   : > { %2715 = vmatprep.subr.bf16.mxu0 %v3889_v13  ;;  %v3976_v13 = vld [vmem:[%s5063_s3 + $0x2c4] ss:$16 sps:$4 sm:$0xff]  }
0x10b0   : > { %2716 = vmatpush1.bf16.msra.mxu0 %v3887_v14  ;;  %v3979_v14 = vld [vmem:[%s5063_s3 + $0x2cc] ss:$16 sps:$4 sm:$0xff]  }
0x10b1   : > { %2717 = vmatprep.subr.bf16.mxu0 %v3895_v15  ;;  %v3974_v15 = vld [vmem:[%s5063_s3 + $0x2c0] ss:$16 sps:$4 sm:$0xff]  }
0x10b4   : > { %2718 = vmatpush1.bf16.msra.mxu0 %v3893_v18  ;;  %v3977_v18 = vld [vmem:[%s5063_s3 + $0x2c8] ss:$16 sps:$4 sm:$0xff]  }
0x10b5   : > { %2719 = vmatprep.subr.bf16.mxu0 %v3901_v19  ;;  %v3982_v19 = vld [vmem:[%s5063_s3 + $0x2e4] ss:$16 sps:$4 sm:$0xff]  }
0x10b8   : > { %2720 = vmatpush1.bf16.msra.mxu0 %v3899_v21  ;;  %v3985_v21 = vld [vmem:[%s5063_s3 + $0x2ec] ss:$16 sps:$4 sm:$0xff]  }
0x10b9   : > { %2721 = vmatprep.subr.bf16.mxu0 %v3907_v23  ;;  %v3980_v23 = vld [vmem:[%s5063_s3 + $0x2e0] ss:$16 sps:$4 sm:$0xff]  }
0x10bc   : > { %2722 = vmatpush1.bf16.msra.mxu0 %v3905_v24  ;;  %v3983_v24 = vld [vmem:[%s5063_s3 + $0x2e8] ss:$16 sps:$4 sm:$0xff]  }
0x10bd   : > { %2723 = vmatprep.subr.bf16.mxu0 %v3913_v25  ;;  %v3988_v25 = vld [vmem:[%s5063_s3 + $0x304] ss:$16 sps:$4 sm:$0xff]  }
0x10c0   : > { %2724 = vmatpush1.bf16.msra.mxu0 %v3911_v26  ;;  %v3991_v26 = vld [vmem:[%s5063_s3 + $0x30c] ss:$16 sps:$4 sm:$0xff]  }
0x10c1   : > { %2725 = vmatprep.subr.bf16.mxu0 %v3919_v28  ;;  %v3986_v28 = vld [vmem:[%s5063_s3 + $0x300] ss:$16 sps:$4 sm:$0xff]  }
0x10c4   : > { %2726 = vmatpush1.bf16.msra.mxu0 %v3917_v29  ;;  %v3989_v29 = vld [vmem:[%s5063_s3 + $0x308] ss:$16 sps:$4 sm:$0xff]  }
0x10c5   : > { %2727 = vmatprep.subr.bf16.mxu0 %v3925_v30  ;;  %v3994_v30 = vld [vmem:[%s5063_s3 + $0x324] ss:$16 sps:$4 sm:$0xff]  }
0x10c8   : > { %2728 = vmatpush1.bf16.msra.mxu0 %v3923_v32  ;;  %v3997_v32 = vld [vmem:[%s5063_s3 + $0x32c] ss:$16 sps:$4 sm:$0xff]  }
0x10c9   : > { %2729 = vmatprep.subr.bf16.mxu0 %v3931_v33  ;;  %v3992_v33 = vld [vmem:[%s5063_s3 + $0x320] ss:$16 sps:$4 sm:$0xff]  }
0x10cc   : > { %2730 = vmatpush1.bf16.msra.mxu0 %v3929_v34  ;;  %v3995_v34 = vld [vmem:[%s5063_s3 + $0x328] ss:$16 sps:$4 sm:$0xff]  }
0x10cd   : > { %2731 = vmatprep.subr.bf16.mxu0 %v3937_v35  ;;  %v4000_v35 = vld [vmem:[%s5063_s3 + $0x344] ss:$16 sps:$4 sm:$0xff]  }
0x10d0   : > { %2732 = vmatpush1.bf16.msra.mxu0 %v3935_v36  ;;  %v4003_v36 = vld [vmem:[%s5063_s3 + $0x34c] ss:$16 sps:$4 sm:$0xff]  }
0x10d1   : > { %2733 = vmatprep.subr.bf16.mxu0 %v3943_v22  ;;  %v4001_v22 = vld [vmem:[%s5063_s3 + $0x348] ss:$16 sps:$4 sm:$0xff]  }
0x10d4   : > { %2734 = vmatpush1.bf16.msra.mxu0 %v3941_v16  ;;  %v4009_v16 = vld [vmem:[%s5063_s3 + $0x36c] ss:$16 sps:$4 sm:$0xff]  }
0x10d5   : > { %2735 = vmatprep.subr.bf16.mxu0 %v3949_v20  ;;  %v4007_v20 = vld [vmem:[%s5063_s3 + $0x368] ss:$16 sps:$4 sm:$0xff]  }
0x10d8   : > { %2736 = vmatpush1.bf16.msra.mxu0 %v3947_v39  ;;  %v4015_v39 = vld [vmem:[%s5063_s3 + $0x38c] ss:$16 sps:$4 sm:$0xff]  }
0x10d9   : > { %2746 = vmatprep.subr.bf16.mxu0 %v3955_v41  ;;  %v4013_v41 = vld [vmem:[%s5063_s3 + $0x388] ss:$16 sps:$4 sm:$0xff]  }
0x1166   : > { %v1787_v45 = vpop.f32.mrb[20].mxu0 }
0x1167   : > { %v1788_v46 = vadd.f32 %v1787_v45, %v1706_v43  ;;  %v1789_v47 = vpop.f32.mrb[21].mxu0  ;;  %v4018_v45 = vld [vmem:[%s5063_s3 + $0x3a4] ss:$16 sps:$4 sm:$0xff]  }
0x1168   : > { %v1790_v48 = vadd.f32 %v1789_v47, %v1707_v44  ;;  %v1791_v49 = vpop.f32.mrb[22].mxu0  ;;  %v4016_v47 = vld [vmem:[%s5063_s3 + $0x3a0] ss:$16 sps:$4 sm:$0xff]  }
0x1169   : > { %v1835_v50 = vmax.f32 %v1788_v46, 0.0  ;;  %v1792_v51 = vpop.f32.mrb[23].mxu0  ;;  %v4021_v46 = vld [vmem:[%s5063_s3 + $0x3ac] ss:$16 sps:$4 sm:$0xff]   ;;  %v4024_v49 = vld [vmem:[%s5063_s3 + $0x3c4] ss:$16 sps:$4 sm:$0xff]  }
0x116a   : > { %v1836_v53 = vmax.f32 %v1790_v48, 0.0  ;;  %v4019_v48 = vld [vmem:[%s5063_s3 + $0x3a8] ss:$16 sps:$4 sm:$0xff]   ;;  %v4022_v51 = vld [vmem:[%s5063_s3 + $0x3c0] ss:$16 sps:$4 sm:$0xff]  }
0x116b   : > { %v1839_v57 = vpack.c.bf16 %v1835_v50, %v1835_v50  ;;  %v4027_v50 = vld [vmem:[%s5063_s3 + $0x3cc] ss:$16 sps:$4 sm:$0xff]  }
0x116c   : > { %v1840_v27 = vpack.c.bf16 %v1836_v53, %v1836_v53  ;;  %v4025_v53 = vld [vmem:[%s5063_s3 + $0x3c8] ss:$16 sps:$4 sm:$0xff]  }
0x116e   : > { %v4764_v60 = vpop.f32.mrb[24].mxu0  ;;  %2655 = vmatprep.mubr.bf16.mxu1 %v1840_v27  ;;  %2737 = vmatprep.mubr.bf16.mxu0 %v1840_v27  ;;  %v4030_v27 = vld [vmem:[%s5063_s3 + $0x3e4] ss:$16 sps:$4 sm:$0xff]  }
0x116f   : > { %v1830_v61 = vpop.f32.mrb[25].mxu0  ;;  %2656 = vmatmul.mubr.bf16.vlgmr.msra.gmra.mrb[24].mxu1 %v1839_v57  ;;  %2738 = vmatmul.mubr.bf16.vlgmr.msra.gmra.mrb[28].mxu0 %v1839_v57  ;;  %v4031_v57 = vld [vmem:[%s5063_s3 + $0x3e8] ss:$16 sps:$4 sm:$0xff]  }
0x1170   : > { %v1831_v62 = vadd.f32 %v1830_v61, %v1709_v56  ;;  %2665 = vmatpush1.bf16.msra.mxu1 %v3950_v54  ;;  %2747 = vmatpush1.bf16.msra.mxu0 %v3953_v55  ;;  %v1832_v63 = vpop.f32.mrb[26].mxu0  ;;  %v4033_v54 = vld [vmem:[%s5063_s3 + $0x3ec] ss:$16 sps:$4 sm:$0xff]   ;;  %v4028_v55 = vld [vmem:[%s5063_s3 + $0x3e0] ss:$16 sps:$4 sm:$0xff]  }
0x1171   : > { %v1833_v3 = vpop.f32.mrb[27].mxu0  ;;  %2666 = vmatprep.subr.bf16.mxu1 %v3958_v58  ;;  %2748 = vmatprep.subr.bf16.mxu0 %v3961_v59  ;;  %v1708_v58 = vunpack.c.l.bf16 %v4749_v52  ;;  %v4036_v59 = vld [vmem:[%s5063_s3 + $0x404] ss:$16 sps:$4 sm:$0xff]   ;;  %v4039_v61 = vld [vmem:[%s5063_s3 + $0x40c] ss:$16 sps:$4 sm:$0xff]  }
0x1172   : > { %v1838_v9 = vmax.f32 %v1831_v62, 0.0  ;;  %v4034_v62 = vld [vmem:[%s5063_s3 + $0x400] ss:$16 sps:$4 sm:$0xff]   ;;  %v4037_v63 = vld [vmem:[%s5063_s3 + $0x408] ss:$16 sps:$4 sm:$0xff]  }
0x1173   : > { %v4045_v3 = vld [vmem:[%s5063_s3 + $0x42c] ss:$16 sps:$4 sm:$0xff]  }
0x1174   : > { %v1842_v5 = vpack.c.bf16 %v1838_v9, %v1838_v9  ;;  %2667 = vmatpush1.bf16.msra.mxu1 %v3956_v0  ;;  %2749 = vmatpush1.bf16.msra.mxu0 %v3959_v1  ;;  %v1829_v0 = vadd.f32 %v4764_v60, %v1708_v58  ;;  %v4042_v1 = vld [vmem:[%s5063_s3 + $0x424] ss:$16 sps:$4 sm:$0xff]   ;;  %v4043_v60 = vld [vmem:[%s5063_s3 + $0x428] ss:$16 sps:$4 sm:$0xff]  }
0x1175   : > { %2668 = vmatprep.subr.bf16.mxu1 %v3964_v2  ;;  %2750 = vmatprep.subr.bf16.mxu0 %v3967_v4  ;;  %v4040_v2 = vld [vmem:[%s5063_s3 + $0x420] ss:$16 sps:$4 sm:$0xff]  }
0x1176   : > { %2696 = vmatprep.mubr.bf16.mxu1 %v1842_v5  ;;  %2778 = vmatprep.mubr.bf16.mxu0 %v1842_v5  ;;  %v1837_v4 = vmax.f32 %v1829_v0, 0.0  ;;  %v4046_v9 = vld [vmem:[%s5064_s4 + $0x40] sm:$0xff]  }
0x1177   : > { %v4047_v5 = vld [vmem:[%s5064_s4 + $0xc0] sm:$0xff]  }
0x1178   : > { %2669 = vmatpush1.bf16.msra.mxu1 %v3962_v7  ;;  %2751 = vmatpush1.bf16.msra.mxu0 %v3965_v8  ;;  %v4048_v7 = vld [vmem:[%s5064_s4] sm:$0xff]  }
0x1179   : > { %2670 = vmatprep.subr.bf16.mxu1 %v3970_v11  ;;  %2752 = vmatprep.subr.bf16.mxu0 %v3973_v31  ;;  %v4049_v8 = vld [vmem:[%s5064_s4 + $0x80] sm:$0xff]   ;;  %v1841_v11 = vpack.c.bf16 %v1837_v4, %v1837_v4  ;;  %v4050_v31 = vld [vmem:[%s5064_s4 + $0x48] sm:$0xff]  }
0x117c   : > { %2671 = vmatpush1.bf16.msra.mxu1 %v3968_v10  ;;  %2753 = vmatpush1.bf16.msra.mxu0 %v3971_v12  ;;  %v4051_v10 = vld [vmem:[%s5064_s4 + $0xc8] sm:$0xff]  }
0x117d   : > { %2672 = vmatprep.subr.bf16.mxu1 %v3976_v13  ;;  %2754 = vmatprep.subr.bf16.mxu0 %v3979_v14  ;;  %v4052_v12 = vld [vmem:[%s5064_s4 + $0x8] sm:$0xff]   ;;  %v4054_v14 = vld [vmem:[%s5064_s4 + $0x50] sm:$0xff]  }
0x117e   : > { %v4053_v13 = vld [vmem:[%s5064_s4 + $0x88] sm:$0xff]  }
0x1180   : > { %2673 = vmatpush1.bf16.msra.mxu1 %v3974_v15  ;;  %2755 = vmatpush1.bf16.msra.mxu0 %v3977_v18  ;;  %v4055_v15 = vld [vmem:[%s5064_s4 + $0xd0] sm:$0xff]  }
0x1181   : > { %2674 = vmatprep.subr.bf16.mxu1 %v3982_v19  ;;  %2756 = vmatprep.subr.bf16.mxu0 %v3985_v21  ;;  %v4056_v18 = vld [vmem:[%s5064_s4 + $0x10] sm:$0xff]   ;;  %v4058_v21 = vld [vmem:[%s5064_s4 + $0x58] sm:$0xff]  }
0x1182   : > { %v4057_v19 = vld [vmem:[%s5064_s4 + $0x90] sm:$0xff]  }
0x1184   : > { %2675 = vmatpush1.bf16.msra.mxu1 %v3980_v23  ;;  %2757 = vmatpush1.bf16.msra.mxu0 %v3983_v24  ;;  %v4059_v23 = vld [vmem:[%s5064_s4 + $0xd8] sm:$0xff]  }
0x1185   : > { %2676 = vmatprep.subr.bf16.mxu1 %v3988_v25  ;;  %2758 = vmatprep.subr.bf16.mxu0 %v3991_v26  ;;  %v4060_v24 = vld [vmem:[%s5064_s4 + $0x18] sm:$0xff]   ;;  %v4062_v26 = vld [vmem:[%s5064_s4 + $0x60] sm:$0xff]  }
0x1186   : > { %v4061_v25 = vld [vmem:[%s5064_s4 + $0x98] sm:$0xff]  }
0x1188   : > { %2677 = vmatpush1.bf16.msra.mxu1 %v3986_v28  ;;  %2759 = vmatpush1.bf16.msra.mxu0 %v3989_v29  ;;  %v4063_v28 = vld [vmem:[%s5064_s4 + $0xe0] sm:$0xff]  }
0x1189   : > { %2678 = vmatprep.subr.bf16.mxu1 %v3994_v30  ;;  %2760 = vmatprep.subr.bf16.mxu0 %v3997_v32  ;;  %v4064_v29 = vld [vmem:[%s5064_s4 + $0x20] sm:$0xff]   ;;  %v4066_v32 = vld [vmem:[%s5064_s4 + $0x68] sm:$0xff]  }
0x118a   : > { %v4065_v30 = vld [vmem:[%s5064_s4 + $0xa0] sm:$0xff]  }
0x118c   : > { %2679 = vmatpush1.bf16.msra.mxu1 %v3992_v33  ;;  %2761 = vmatpush1.bf16.msra.mxu0 %v3995_v34  ;;  %v4067_v33 = vld [vmem:[%s5064_s4 + $0xe8] sm:$0xff]  }
0x118d   : > { %2680 = vmatprep.subr.bf16.mxu1 %v4000_v35  ;;  %2762 = vmatprep.subr.bf16.mxu0 %v4003_v36  ;;  %v4068_v34 = vld [vmem:[%s5064_s4 + $0x28] sm:$0xff]   ;;  %v4070_v36 = vld [vmem:[%s5064_s4 + $0x70] sm:$0xff]  }
0x118e   : > { %v4069_v35 = vld [vmem:[%s5064_s4 + $0xa8] sm:$0xff]  }
0x1190   : > { %2681 = vmatpush1.bf16.msra.mxu1 %v3998_v37  ;;  %2763 = vmatpush1.bf16.msra.mxu0 %v4001_v22  ;;  %v4071_v37 = vld [vmem:[%s5064_s4 + $0xf0] sm:$0xff]  }
0x1191   : > { %2682 = vmatprep.subr.bf16.mxu1 %v4006_v6  ;;  %2764 = vmatprep.subr.bf16.mxu0 %v4009_v16  ;;  %v4072_v22 = vld [vmem:[%s5064_s4 + $0x30] sm:$0xff]   ;;  %v4074_v16 = vld [vmem:[%s5064_s4 + $0x78] sm:$0xff]  }
0x1192   : > { %v4073_v6 = vld [vmem:[%s5064_s4 + $0xb0] sm:$0xff]  }
0x1194   : > { %2683 = vmatpush1.bf16.msra.mxu1 %v4004_v17  ;;  %2765 = vmatpush1.bf16.msra.mxu0 %v4007_v20  ;;  %v4075_v17 = vld [vmem:[%s5064_s4 + $0xf8] sm:$0xff]  }
0x1195   : > { %2684 = vmatprep.subr.bf16.mxu1 %v4012_v38  ;;  %2766 = vmatprep.subr.bf16.mxu0 %v4015_v39  ;;  %v4076_v20 = vld [vmem:[%s5064_s4 + $0x38] sm:$0xff]   ;;  %v2615_v39 = vrot.slane %v1706_v43, 1 }
0x1196   : > { %v4077_v38 = vld [vmem:[%s5064_s4 + $0xb8] sm:$0xff]  }
0x1198   : > { %2685 = vmatpush1.bf16.msra.mxu1 %v4010_v40  ;;  %2767 = vmatpush1.bf16.msra.mxu0 %v4013_v41  ;;  %v2617_v40 = vrot.slane %v1708_v58, 1  ;;  %v2616_v41 = vrot.slane %v1707_v44, 1 }
0x1199   : > { %2686 = vmatprep.subr.bf16.mxu1 %v4018_v45  ;;  %2768 = vmatprep.subr.bf16.mxu0 %v4021_v46  ;;  %v2618_v45 = vrot.slane %v1709_v56, 1 }
0x119c   : > { %2687 = vmatpush1.bf16.msra.mxu1 %v4016_v47  ;;  %2769 = vmatpush1.bf16.msra.mxu0 %v4019_v48 }
0x119d   : > { %2688 = vmatprep.subr.bf16.mxu1 %v4024_v49  ;;  %2770 = vmatprep.subr.bf16.mxu0 %v4027_v50 }
0x11a0   : > { %2689 = vmatpush1.bf16.msra.mxu1 %v4022_v51  ;;  %2771 = vmatpush1.bf16.msra.mxu0 %v4025_v53 }
0x11a1   : > { %2690 = vmatprep.subr.bf16.mxu1 %v4030_v27  ;;  %2772 = vmatprep.subr.bf16.mxu0 %v4033_v54 }
0x11a4   : > { %2691 = vmatpush1.bf16.msra.mxu1 %v4028_v55  ;;  %2773 = vmatpush1.bf16.msra.mxu0 %v4031_v57 }
0x11a5   : > { %2692 = vmatprep.subr.bf16.mxu1 %v4036_v59  ;;  %2774 = vmatprep.subr.bf16.mxu0 %v4039_v61 }
0x11a8   : > { %2693 = vmatpush1.bf16.msra.mxu1 %v4034_v62  ;;  %2775 = vmatpush1.bf16.msra.mxu0 %v4037_v63  ;;  %v2859_v63 = vld [vmem:[%s5064_s4 + $0x100] sm:$0x1] }
0x11a9   : > { %2694 = vmatprep.subr.bf16.mxu1 %v4042_v1  ;;  %2776 = vmatprep.subr.bf16.mxu0 %v4045_v3  ;;  %v2860_v3 = vunpack.c.l.bf16 %v2859_v63 }
0x11ac   : > { %2695 = vmatpush1.bf16.msra.mxu1 %v4040_v2  ;;  %2777 = vmatpush1.bf16.msra.mxu0 %v4043_v60 }
0x11ad   : > { %3477 = vmatprep.subr.bf16.mxu1 %v4046_v9  ;;  %3499 = vmatprep.subr.bf16.mxu0 %v4047_v5 }
0x11af   : > { %2697 = vmatmul.mubr.bf16.vlgmr.msra.gmra.mrb[24].mxu1 %v1841_v11  ;;  %2779 = vmatmul.mubr.bf16.vlgmr.msra.gmra.mrb[28].mxu0 %v1841_v11 }
0x11b0   : > { %3478 = vmatpush3.bf16.msra.mxu1 %v4048_v7  ;;  %3500 = vmatpush3.bf16.msra.mxu0 %v4049_v8 }
0x11b1   : > { %3479 = vmatprep.subr.bf16.mxu1 %v4050_v31  ;;  %3501 = vmatprep.subr.bf16.mxu0 %v4051_v10 }
0x11b4   : > { %3480 = vmatpush3.bf16.msra.mxu1 %v4052_v12  ;;  %3502 = vmatpush3.bf16.msra.mxu0 %v4053_v13 }
0x11b5   : > { %3481 = vmatprep.subr.bf16.mxu1 %v4054_v14  ;;  %3503 = vmatprep.subr.bf16.mxu0 %v4055_v15 }
0x11b8   : > { %3482 = vmatpush3.bf16.msra.mxu1 %v4056_v18  ;;  %3504 = vmatpush3.bf16.msra.mxu0 %v4057_v19 }
0x11b9   : > { %3483 = vmatprep.subr.bf16.mxu1 %v4058_v21  ;;  %3505 = vmatprep.subr.bf16.mxu0 %v4059_v23 }
0x11bc   : > { %3484 = vmatpush3.bf16.msra.mxu1 %v4060_v24  ;;  %3506 = vmatpush3.bf16.msra.mxu0 %v4061_v25 }
0x11bd   : > { %3485 = vmatprep.subr.bf16.mxu1 %v4062_v26  ;;  %3507 = vmatprep.subr.bf16.mxu0 %v4063_v28 }
0x11c0   : > { %3486 = vmatpush3.bf16.msra.mxu1 %v4064_v29  ;;  %3508 = vmatpush3.bf16.msra.mxu0 %v4065_v30 }
0x11c1   : > { %3487 = vmatprep.subr.bf16.mxu1 %v4066_v32  ;;  %3509 = vmatprep.subr.bf16.mxu0 %v4067_v33 }
0x11c4   : > { %3488 = vmatpush3.bf16.msra.mxu1 %v4068_v34  ;;  %3510 = vmatpush3.bf16.msra.mxu0 %v4069_v35 }
0x11c5   : > { %3489 = vmatprep.subr.bf16.mxu1 %v4070_v36  ;;  %3511 = vmatprep.subr.bf16.mxu0 %v4071_v37 }
0x11c8   : > { %3490 = vmatpush3.bf16.msra.mxu1 %v4072_v22  ;;  %3512 = vmatpush3.bf16.msra.mxu0 %v4073_v6 }
0x11c9   : > { %3491 = vmatprep.subr.bf16.mxu1 %v4074_v16  ;;  %3513 = vmatprep.subr.bf16.mxu0 %v4075_v17 }
0x11cc   : > { %3492 = vmatpush3.bf16.msra.mxu1 %v4076_v20  ;;  %3514 = vmatpush3.bf16.msra.mxu0 %v4077_v38 }
0x1282   : > { %v2698_v46 = vpop.f32.mrb[24].mxu1  ;;  %v2780_v47 = vpop.f32.mrb[28].mxu0 }
0x1283   : > { %v3790_v48 = vadd.f32 %v2698_v46, %v2615_v39  ;;  %v3792_v49 = vadd.f32 %v2780_v47, %v2617_v40  ;;  %v2700_v50 = vpop.f32.mrb[25].mxu1  ;;  %v2782_v51 = vpop.f32.mrb[29].mxu0 }
0x1284   : > { %v3791_v53 = vadd.f32 %v2700_v50, %v2616_v41  ;;  %v3793_v27 = vadd.f32 %v2782_v51, %v2618_v45  ;;  %v2702_v54 = vpop.f32.mrb[26].mxu1  ;;  %v2784_v55 = vpop.f32.mrb[30].mxu0 }
0x1285   : > { %v2787_v43 = vmax.f32 %v3790_v48, 0.0  ;;  %v2789_v57 = vmax.f32 %v3792_v49, 0.0  ;;  %v2703_v59 = vpop.f32.mrb[27].mxu1  ;;  %v2785_v58 = vpop.f32.mrb[31].mxu0 }
0x1286   : > { %v2788_v61 = vmax.f32 %v3791_v53, 0.0  ;;  %v2790_v42 = vmax.f32 %v3793_v27, 0.0 }
0x1287   : > { %v2791_v52 = vpack.c.bf16 %v2787_v43, %v2787_v43  ;;  %v2793_v56 = vpack.c.bf16 %v2789_v57, %v2789_v57 }
0x1288   : > { %v2792_v44 = vpack.c.bf16 %v2788_v61, %v2788_v61  ;;  %v2794_v62 = vpack.c.bf16 %v2790_v42, %v2790_v42 }
0x128a   : > { %3085 = vmatprep.mubr.bf16.mxu1 %v2792_v44  ;;  %3125 = vmatprep.mubr.bf16.mxu0 %v2794_v62 }
0x128b   : > { %3086 = vmatmul.mubr.bf16.vlgmr.msra.gmra.mrb[28].mxu1 %v2791_v52  ;;  %3126 = vmatmul.mubr.bf16.vlgmr.msra.gmra.mrb[32].mxu0 %v2793_v56 }
0x135e   : > { %v3493_v0 = vpop.f32.mrb[28].mxu1  ;;  %v3515_v1 = vpop.f32.mrb[32].mxu0 }
0x135f   : > { %v3494_v2 = vpop.f32.mrb[29].mxu1  ;;  %v3516_v60 = vpop.f32.mrb[33].mxu0 }
0x1360   : > { %v3495_v4 = vadd.f32 %v3494_v2, %v3493_v0  ;;  %v3517_v9 = vadd.f32 %v3516_v60, %v3515_v1  ;;  %v3496_v5 = vpop.f32.mrb[30].mxu1  ;;  %v3518_v7 = vpop.f32.mrb[34].mxu0 }
0x1361   : > { %v3497_v8 = vpop.f32.mrb[31].mxu1  ;;  %v3519_v11 = vpop.f32.mrb[35].mxu0 }
0x1362   : > { %v3088_v31 = vadd.f32 %v3495_v4, %v2860_v3 }
0x1364   : > { %v3128_v10 = vadd.f32 %v3517_v9, %v3088_v31 }
0x1366   : > { %4106 = vtanh.f32 %v3128_v10 }
0x1370   : > { %v4107_v12 = vpop.eup %4106 }
0x1371   : > { %3134 = vst [vmem:[%s220_s15] sm:$0x1] %v4107_v12 }
0x1372 PF: > { %s15_s18 = sadd.s32 1, %s4114_s18  }
0x1373   : > { %p12_p4 = scmp.ge.s32.totalorder %s15_s18, 4  }
0x1375   :  { %14 = sbr.rel (!%p12_p4) target bundleno = 1 (0x1), region = 70 }

</bundles_post_ra>
